<compile_context>
chip_gen: v7x
topology: tpu7x:2x2x1
jax: 0.10.0
libtpu: 0.0.40
codegen_flags: <defaults>
</compile_context>

<pallas_src>
import jax
import jax.numpy as jnp
from jax import lax
from jax.experimental import pallas as pl
from jax.experimental.pallas import tpu as pltpu  # noqa: F401  (kept for TPU-specific params if needed)

# ---------------- small demo configuration ----------------
B = 2            # batch
C = 8            # n_channel
T = 64           # time_length (must equal hidden_dim for the reference model's shapes)
P = 8            # timePatch_size
N = T // P       # patch_num = 8
F = C * P        # feature_size of a flattened patch = 64
H = T            # hidden_dim (== time_length, required by the reference forward)
FDIM = 256       # f_dim inside FeatureToAdjacencyMatrix (hard-coded in the module)
EPS = 1e-5       # LayerNorm / BatchNorm eps (PyTorch default)
LANES = 128      # lane width for the padded binaries output


# ---------------- fused forward kernel (single invocation, batch folded into M) ----------------
def _fused_kernel(x2_ref, tmp_ref,
                  a_row, b_row, w_emb, b_emb,
                  red_v, m_v, v_v, u_v,
                  red_s, m_s, v_s, u_s,
                  scale2, shift2,
                  bsel, gsum, pad_m, expand_bd, rep_rows,
                  avg_dup, dup_m, h_avg,
                  gcomb, bcomb,
                  w0_bd, w1_bd, gbias, a_vis, a_sem,
                  mask_l, mask_r,
                  vs_out, bins_out):
    f32 = jnp.float32
    x2 = x2_ref[...]                                               # (B*C, T)
    tmp = tmp_ref[...]                                             # (B*N, F)

    # ---- TimeDisentangle: LayerNorm(F) + folded BatchNorm1d(F), batch folded into rows ----
    mu = jnp.mean(tmp, axis=-1, keepdims=True)
    var = jnp.mean((tmp - mu) ** 2, axis=-1, keepdims=True)
    y = (tmp - mu) * lax.rsqrt(var + EPS) * a_row[...] + b_row[...]

    # ---- shared embedding for both selectors (weights lane-concatenated) ----
    h = jnp.maximum(
        jnp.dot(y, w_emb[...], preferred_element_type=f32) + b_emb[...], 0.0)     # (B*N, 2*FDIM)

    # ---- collapsed q/k/pp selector path: adjacency logits land in (B, N) lane layout ----
    adj_halves = []
    for s, red, m_mat, v_row, u_row in ((0, red_v, m_v, v_v, u_v),
                                        (1, red_s, m_s, v_s, u_s)):
        hs = h[:, s * FDIM:(s + 1) * FDIM]                         # (B*N, FDIM), vreg-aligned slice
        hw = jnp.dot(red[...], hs, preferred_element_type=f32)     # (B, FDIM)  wpp-weighted patch sum
        t = jnp.dot(hw, m_mat[...], preferred_element_type=f32) + v_row[...]      # (B, FDIM)
        c = jnp.sum(hw * u_row[...], axis=-1, keepdims=True)       # (B, 1)
        # per-sample contraction adj[b,n] = <hs[b*N+n,:], t[b,:]> (transposed dot, no q.T materialized)
        full = lax.dot_general(t, hs, (((1,), (1,)), ((), ())),
                               preferred_element_type=f32)         # (B, B*N)
        adj_halves.append(
            jnp.dot(full * bsel[...], gsum[...], preferred_element_type=f32) + c)  # (B, N)

    adj_cat = jnp.concatenate(adj_halves, axis=1)                  # (B, 2N)  visual | semantic
    bins_cat = jax.nn.sigmoid(adj_cat * scale2[...] + shift2[...])  # folded BatchNorm1d(N) + pp bias
    bins_out[...] = jnp.dot(bins_cat, pad_m[...], preferred_element_type=f32)     # (B, 128) lane-dense

    # ---- hard gating in lane-concatenated (B*C, 2T) layout ----
    keep = (bins_cat > 0.5).astype(f32)                            # (B, 2N), exact 0/1
    mask_rows = jnp.dot(keep, expand_bd[...], preferred_element_type=f32)         # (B, 2T)
    mask_cc = jnp.dot(rep_rows[...], mask_rows, preferred_element_type=f32)       # (B*C, 2T)
    rep_cc = jnp.dot(x2, avg_dup[...], preferred_element_type=f32)  # per-(channel,patch) means, dup'd
    x_cc = jnp.dot(x2, dup_m[...], preferred_element_type=f32)      # x duplicated into both lane halves
    gated = jnp.where(mask_cc > 0.5, x_cc, rep_cc)                  # (B*C, 2T)

    # ---- output LayerNorm(T) per lane half (block mean via constant matmul) + folded conv_bn ----
    gmu = jnp.dot(gated, h_avg[...], preferred_element_type=f32)
    dev = gated - gmu
    gvar = jnp.dot(dev * dev, h_avg[...], preferred_element_type=f32)
    r = dev * lax.rsqrt(gvar + EPS) * gcomb[...] + bcomb[...]

    # ---- Chebynet (K=2): x@W0 + A@(x@W1) + (b0+b1), stream adjacency selected by lane masks ----
    s0 = jnp.dot(r, w0_bd[...], preferred_element_type=f32)         # block-diag(W0, W0)
    u1 = jnp.dot(r, w1_bd[...], preferred_element_type=f32)         # block-diag(W1, W1)
    av = jnp.dot(a_vis[...], u1, preferred_element_type=f32)        # relu(visualBrain), per-sample block-diag
    am = jnp.dot(a_sem[...], u1, preferred_element_type=f32)        # relu(semanticBrain)
    vs_out[...] = jnp.maximum(s0 + av * mask_l[...] + am * mask_r[...] + gbias[...], 0.0)


_WEIGHT_ORDER = [
    "a_row", "b_row", "w_emb", "b_emb",
    "red_v", "m_v", "v_v", "u_v",
    "red_s", "m_s", "v_s", "u_s",
    "scale2", "shift2",
    "bsel", "gsum", "pad_m", "expand_bd", "rep_rows",
    "avg_dup", "dup_m", "h_avg",
    "gcomb", "bcomb",
    "w0_bd", "w1_bd", "gbias", "a_vis", "a_sem",
    "mask_l", "mask_r",
]


def run_fused(x2, tmp, kp):
    weights = [kp[k] for k in _WEIGHT_ORDER]
    vs, bins = pl.pallas_call(
        _fused_kernel,
        out_shape=[jax.ShapeDtypeStruct((B * C, 2 * T), jnp.float32),
                   jax.ShapeDtypeStruct((B, LANES), jnp.float32)],
    )(x2, tmp, *weights)
    return vs, bins


# ---------------- glue: loss + full forward ----------------
def compute_time_loss(vb, sb, target_coverage=0.8):
    loss_cross = jnp.sum(vb * sb)
    target = target_coverage * vb.shape[1]
    coverage = jnp.abs(jnp.sum(vb) - target) + jnp.abs(jnp.sum(sb) - target)
    return (coverage + loss_cross) / vb.shape[0]


def _forward_impl(x, kp):
    x3 = x.reshape(B, C, T)                                        # == x.squeeze() for B > 1
    x2 = x3.reshape(B * C, T)
    # unfold(P, step=P) + permute + flatten: the only pre-kernel XLA op (a 4 KB transpose)
    tmp = x3.reshape(B, C, N, P).transpose(0, 2, 1, 3).reshape(B * N, C * P)
    vs, bins = run_fused(x2, tmp, kp)
    vs3 = vs.reshape(B, C, 2 * T)
    v_x = vs3[:, :, :H]
    s_x = vs3[:, :, H:]
    vis_bin = bins[:, :N][:, :, None]                              # (B, N, 1), as in the reference
    sem_bin = bins[:, N:2 * N][:, :, None]
    loss_time = compute_time_loss(vis_bin, sem_bin)
    return v_x, s_x, vis_bin, sem_bin, loss_time


_forward_jit = jax.jit(_forward_impl)


def forward(x, kp):
    v_x, s_x, vis_bin, sem_bin, loss_time = _forward_jit(x, kp)
    # dropout is identity in eval mode; returned brain matrices are the int 0 (as in reference)
    return v_x, s_x, [vis_bin, sem_bin], [0, 0], loss_time


# ---------------- deterministic parameter initialization ----------------
def init_params(key):
    ks = iter(jax.random.split(key, 32))

    def xavier(k, shape):
        std = (2.0 / (shape[-2] + shape[-1])) ** 0.5
        return std * jax.random.normal(k, shape, dtype=jnp.float32)

    def linear_w(k, fin, fout):
        bound = 1.0 / (fin ** 0.5)
        return jax.random.uniform(k, (fin, fout), jnp.float32, -bound, bound)

    def linear_b(k, fin, fout):
        bound = 1.0 / (fin ** 0.5)
        return jax.random.uniform(k, (1, fout), jnp.float32, -bound, bound)

    def selector():
        return dict(
            w_emb=linear_w(next(ks), F, FDIM), b_emb=linear_b(next(ks), F, FDIM),
            wq=linear_w(next(ks), FDIM, FDIM), bq=linear_b(next(ks), FDIM, FDIM),
            wk=linear_w(next(ks), FDIM, FDIM), bk=linear_b(next(ks), FDIM, FDIM),
            wpp=linear_w(next(ks), N, 1), bpp=linear_b(next(ks), N, 1).reshape(()),
        )

    vis, sem = selector(), selector()
    return dict(
        vis=vis, sem=sem,
        # TimeDisentangle norms (fresh-module defaults, eval mode)
        ln_g=jnp.ones((1, F), jnp.float32), ln_b=jnp.zeros((1, F), jnp.float32),
        bn1_m=jnp.zeros((1, F), jnp.float32), bn1_v=jnp.ones((1, F), jnp.float32),
        bn1_g=jnp.ones((1, F), jnp.float32), bn1_b=jnp.zeros((1, F), jnp.float32),
        bn2_m=jnp.zeros((1, N), jnp.float32), bn2_v=jnp.ones((1, N), jnp.float32),
        bn2_g=jnp.ones((1, N), jnp.float32), bn2_b=jnp.zeros((1, N), jnp.float32),
        out_ln_g=jnp.ones((1, T), jnp.float32), out_ln_b=jnp.zeros((1, T), jnp.float32),
        conv_bn_m=jnp.zeros((1, T), jnp.float32), conv_bn_v=jnp.ones((1, T), jnp.float32),
        conv_bn_g=jnp.ones((1, T), jnp.float32), conv_bn_b=jnp.zeros((1, T), jnp.float32),
        visualBrain=xavier(next(ks), (C, C)), semanticBrain=xavier(next(ks), (C, C)),
        gc_w0=xavier(next(ks), (H, H)), gc_b0=jnp.full((1, H), 0.1, jnp.float32),
        gc_w1=xavier(next(ks), (H, H)), gc_b1=jnp.full((1, H), 0.1, jnp.float32),
    )


def _block_diag(a, b):
    r1, c1 = a.shape
    r2, c2 = b.shape
    out = jnp.zeros((r1 + r2, c1 + c2), a.dtype)
    return out.at[:r1, :c1].set(a).at[r1:, c1:].set(b)


def prepare_kernel_params(p):
    """One-time host-side prep: fold every BatchNorm running stat, collapse the
    q/k/pp attention path into per-selector (M, v, u, shift) constants, and build
    all constant layout matrices (patch-average, patch-expand, lane duplication,
    half-mean, block-diag GCN weights, relu'd brain adjacencies)."""
    def bn_fold(m, v, g, b):
        s = g * lax.rsqrt(v + EPS)
        return s, b - m * s

    # LayerNorm(F) gamma/beta combined with folded BatchNorm1d(F)
    bn1_s, bn1_b = bn_fold(p["bn1_m"], p["bn1_v"], p["bn1_g"], p["bn1_b"])
    a_row = p["ln_g"] * bn1_s
    b_row = p["ln_b"] * bn1_s + bn1_b

    # output LayerNorm(T) combined with folded conv_bn, tiled over the two lane halves
    cbn_s, cbn_b = bn_fold(p["conv_bn_m"], p["conv_bn_v"], p["conv_bn_g"], p["conv_bn_b"])
    gcomb = jnp.tile(p["out_ln_g"] * cbn_s, (1, 2))
    bcomb = jnp.tile(p["out_ln_b"] * cbn_s + cbn_b, (1, 2))

    # folded BatchNorm1d(patch_num) (shared between the two selectors)
    s2 = p["bn2_g"] * lax.rsqrt(p["bn2_v"] + EPS)                  # (1, N)
    base_shift = p["bn2_b"] - p["bn2_m"] * s2                      # (1, N)

    eye_b = jnp.eye(B, dtype=jnp.float32)

    def collapse(sel):
        wq, bq = sel["wq"], sel["bq"]
        wk, bk = sel["wk"], sel["bk"]
        wpp = sel["wpp"].reshape(1, N)
        sw = jnp.sum(wpp)
        m_mat = wk @ wq.T                                          # (FDIM, FDIM)
        v_row = sw * (bk @ wq.T)                                   # (1, FDIM)
        u_row = bq @ wk.T                                          # (1, FDIM)
        cc = sw * jnp.sum(bq * bk) + sel["bpp"]                    # scalar (includes pp bias)
        red = jnp.kron(eye_b, wpp)                                 # (B, B*N), per-sample wpp blocks
        shift_row = base_shift + cc * s2                           # (1, N)
        return m_mat, v_row, u_row, red, shift_row

    m_v, v_v, u_v, red_v, shift_v = collapse(p["vis"])
    m_s, v_s, u_s, red_s, shift_s = collapse(p["sem"])

    w_emb = jnp.concatenate([p["vis"]["w_emb"], p["sem"]["w_emb"]], axis=1)   # (F, 2*FDIM)
    b_emb = jnp.concatenate([p["vis"]["b_emb"], p["sem"]["b_emb"]], axis=1)   # (1, 2*FDIM)

    eye_n = jnp.eye(N, dtype=jnp.float32)
    expand_m = jnp.kron(eye_n, jnp.ones((1, P), jnp.float32))                 # (N, T)
    avg_m = jnp.kron(eye_n, jnp.ones((P, P), jnp.float32) / P)                # (T, T)

    return dict(
        a_row=a_row, b_row=b_row, w_emb=w_emb, b_emb=b_emb,
        red_v=red_v, m_v=m_v, v_v=v_v, u_v=u_v,
        red_s=red_s, m_s=m_s, v_s=v_s, u_s=u_s,
        scale2=jnp.tile(s2, (1, 2)),                                          # (1, 2N)
        shift2=jnp.concatenate([shift_v, shift_s], axis=1),                   # (1, 2N)
        bsel=jnp.kron(eye_b, jnp.ones((1, N), jnp.float32)),                  # (B, B*N)
        gsum=jnp.tile(eye_n, (B, 1)),                                         # (B*N, N)
        pad_m=jnp.eye(2 * N, LANES, dtype=jnp.float32),                       # (2N, 128)
        expand_bd=_block_diag(expand_m, expand_m),                            # (2N, 2T)
        rep_rows=jnp.kron(eye_b, jnp.ones((C, 1), jnp.float32)),              # (B*C, B)
        avg_dup=jnp.concatenate([avg_m, avg_m], axis=1),                      # (T, 2T)
        dup_m=jnp.concatenate([jnp.eye(T, dtype=jnp.float32)] * 2, axis=1),   # (T, 2T)
        h_avg=_block_diag(jnp.ones((T, T), jnp.float32) / T,
                          jnp.ones((T, T), jnp.float32) / T),                 # (2T, 2T)
        gcomb=gcomb, bcomb=bcomb,
        w0_bd=_block_diag(p["gc_w0"], p["gc_w0"]),                            # (2T, 2T)
        w1_bd=_block_diag(p["gc_w1"], p["gc_w1"]),
        gbias=jnp.tile(p["gc_b0"] + p["gc_b1"], (1, 2)),                      # (1, 2T)
        a_vis=jnp.kron(eye_b, jnp.maximum(p["visualBrain"], 0.0)),            # normalize_A == relu(A)
        a_sem=jnp.kron(eye_b, jnp.maximum(p["semanticBrain"], 0.0)),
        mask_l=jnp.concatenate([jnp.ones((1, T), jnp.float32),
                                jnp.zeros((1, T), jnp.float32)], axis=1),
        mask_r=jnp.concatenate([jnp.zeros((1, T), jnp.float32),
                                jnp.ones((1, T), jnp.float32)], axis=1),
    )


if __name__ == "__main__":
    key = jax.random.PRNGKey(0)
    k_x, k_p = jax.random.split(key)
    x = jax.random.normal(k_x, (B, 1, C, T), dtype=jnp.float32)   # (batch, 1, channel, time)
    params = init_params(k_p)
    kparams = prepare_kernel_params(params)

    v_x, s_x, binaries, brains, loss_time = forward(x, kparams)

    jax.block_until_ready(v_x)
    jax.block_until_ready(s_x)
    jax.block_until_ready(binaries[0])
    jax.block_until_ready(binaries[1])
    jax.block_until_ready(loss_time)

    assert v_x.shape == (B, C, H) and s_x.shape == (B, C, H)
    assert binaries[0].shape == (B, N, 1) and binaries[1].shape == (B, N, 1)
    assert brains == [0, 0]
    assert loss_time.shape == ()
    print("KERNEL_OK")
</pallas_src>

<mosaic_0001>
module attributes {stable_mosaic.version = 11 : i64} {
  func.func @_fused_kernel(%arg0: memref<16x64xf32, #tpu.memory_space<vmem>>, %arg1: memref<16x64xf32, #tpu.memory_space<vmem>>, %arg2: memref<1x64xf32, #tpu.memory_space<vmem>>, %arg3: memref<1x64xf32, #tpu.memory_space<vmem>>, %arg4: memref<64x512xf32, #tpu.memory_space<vmem>>, %arg5: memref<1x512xf32, #tpu.memory_space<vmem>>, %arg6: memref<2x16xf32, #tpu.memory_space<vmem>>, %arg7: memref<256x256xf32, #tpu.memory_space<vmem>>, %arg8: memref<1x256xf32, #tpu.memory_space<vmem>>, %arg9: memref<1x256xf32, #tpu.memory_space<vmem>>, %arg10: memref<2x16xf32, #tpu.memory_space<vmem>>, %arg11: memref<256x256xf32, #tpu.memory_space<vmem>>, %arg12: memref<1x256xf32, #tpu.memory_space<vmem>>, %arg13: memref<1x256xf32, #tpu.memory_space<vmem>>, %arg14: memref<1x16xf32, #tpu.memory_space<vmem>>, %arg15: memref<1x16xf32, #tpu.memory_space<vmem>>, %arg16: memref<2x16xf32, #tpu.memory_space<vmem>>, %arg17: memref<16x8xf32, #tpu.memory_space<vmem>>, %arg18: memref<16x128xf32, #tpu.memory_space<vmem>>, %arg19: memref<16x128xf32, #tpu.memory_space<vmem>>, %arg20: memref<16x2xf32, #tpu.memory_space<vmem>>, %arg21: memref<64x128xf32, #tpu.memory_space<vmem>>, %arg22: memref<64x128xf32, #tpu.memory_space<vmem>>, %arg23: memref<128x128xf32, #tpu.memory_space<vmem>>, %arg24: memref<1x128xf32, #tpu.memory_space<vmem>>, %arg25: memref<1x128xf32, #tpu.memory_space<vmem>>, %arg26: memref<128x128xf32, #tpu.memory_space<vmem>>, %arg27: memref<128x128xf32, #tpu.memory_space<vmem>>, %arg28: memref<1x128xf32, #tpu.memory_space<vmem>>, %arg29: memref<16x16xf32, #tpu.memory_space<vmem>>, %arg30: memref<16x16xf32, #tpu.memory_space<vmem>>, %arg31: memref<1x128xf32, #tpu.memory_space<vmem>>, %arg32: memref<1x128xf32, #tpu.memory_space<vmem>>, %arg33: memref<16x128xf32, #tpu.memory_space<vmem>>, %arg34: memref<2x128xf32, #tpu.memory_space<vmem>>) attributes {dimension_semantics = [], scalar_prefetch = 0 : i64, scratch_operands = 0 : i64, tpu.core_type = #tpu.core_type<tc>} {
    %c0 = arith.constant 0 : index
    %c0_0 = arith.constant 0 : index
    %0 = vector.load %arg0[%c0, %c0_0] : memref<16x64xf32, #tpu.memory_space<vmem>>, vector<16x64xf32>
    %c0_1 = arith.constant 0 : index
    %c0_2 = arith.constant 0 : index
    %1 = vector.load %arg1[%c0_1, %c0_2] : memref<16x64xf32, #tpu.memory_space<vmem>>, vector<16x64xf32>
    %cst = arith.constant dense<0.000000e+00> : vector<16xf32>
    %2 = vector.multi_reduction <add>, %1, %cst [1] : vector<16x64xf32> to vector<16xf32>
    %3 = vector.shape_cast %2 : vector<16xf32> to vector<16x1xf32>
    %cst_3 = arith.constant 6.400000e+01 : f32
    %4 = vector.broadcast %cst_3 : f32 to vector<16x1xf32>
    %5 = arith.divf %3, %4 : vector<16x1xf32>
    %6 = vector.broadcast %5 : vector<16x1xf32> to vector<16x64xf32>
    %7 = arith.subf %1, %6 : vector<16x64xf32>
    %8 = arith.mulf %7, %7 : vector<16x64xf32>
    %cst_4 = arith.constant dense<0.000000e+00> : vector<16xf32>
    %9 = vector.multi_reduction <add>, %8, %cst_4 [1] : vector<16x64xf32> to vector<16xf32>
    %10 = vector.shape_cast %9 : vector<16xf32> to vector<16x1xf32>
    %cst_5 = arith.constant 6.400000e+01 : f32
    %11 = vector.broadcast %cst_5 : f32 to vector<16x1xf32>
    %12 = arith.divf %10, %11 : vector<16x1xf32>
    %13 = vector.broadcast %5 : vector<16x1xf32> to vector<16x64xf32>
    %14 = arith.subf %1, %13 : vector<16x64xf32>
    %cst_6 = arith.constant 9.99999974E-6 : f32
    %15 = vector.broadcast %cst_6 : f32 to vector<16x1xf32>
    %16 = arith.addf %12, %15 : vector<16x1xf32>
    %17 = math.rsqrt %16 : vector<16x1xf32>
    %18 = vector.broadcast %17 : vector<16x1xf32> to vector<16x64xf32>
    %19 = arith.mulf %14, %18 : vector<16x64xf32>
    %c0_7 = arith.constant 0 : index
    %c0_8 = arith.constant 0 : index
    %20 = vector.load %arg2[%c0_7, %c0_8] : memref<1x64xf32, #tpu.memory_space<vmem>>, vector<1x64xf32>
    %21 = vector.broadcast %20 : vector<1x64xf32> to vector<16x64xf32>
    %22 = arith.mulf %19, %21 : vector<16x64xf32>
    %c0_9 = arith.constant 0 : index
    %c0_10 = arith.constant 0 : index
    %23 = vector.load %arg3[%c0_9, %c0_10] : memref<1x64xf32, #tpu.memory_space<vmem>>, vector<1x64xf32>
    %24 = vector.broadcast %23 : vector<1x64xf32> to vector<16x64xf32>
    %25 = arith.addf %22, %24 : vector<16x64xf32>
    %c0_11 = arith.constant 0 : index
    %c0_12 = arith.constant 0 : index
    %26 = vector.load %arg4[%c0_11, %c0_12] : memref<64x512xf32, #tpu.memory_space<vmem>>, vector<64x512xf32>
    %cst_13 = arith.constant dense<0.000000e+00> : vector<16x512xf32>
    %27 = tpu.matmul %25, %26, %cst_13 {dimension_numbers = #tpu.dot_dimension_numbers<[1], [0], [0], [1], [0, 0, 1, 1], [], []>} : vector<16x64xf32>, vector<64x512xf32>, vector<16x512xf32> -> vector<16x512xf32>
    %c0_14 = arith.constant 0 : index
    %c0_15 = arith.constant 0 : index
    %28 = vector.load %arg5[%c0_14, %c0_15] : memref<1x512xf32, #tpu.memory_space<vmem>>, vector<1x512xf32>
    %29 = vector.broadcast %28 : vector<1x512xf32> to vector<16x512xf32>
    %30 = arith.addf %27, %29 : vector<16x512xf32>
    %cst_16 = arith.constant 0.000000e+00 : f32
    %31 = vector.broadcast %cst_16 : f32 to vector<16x512xf32>
    %32 = arith.maximumf %30, %31 : vector<16x512xf32>
    %33 = vector.extract_strided_slice %32 {offsets = [0, 0], sizes = [16, 256], strides = [1, 1]} : vector<16x512xf32> to vector<16x256xf32>
    %c0_17 = arith.constant 0 : index
    %c0_18 = arith.constant 0 : index
    %34 = vector.load %arg6[%c0_17, %c0_18] : memref<2x16xf32, #tpu.memory_space<vmem>>, vector<2x16xf32>
    %cst_19 = arith.constant dense<0.000000e+00> : vector<2x256xf32>
    %35 = tpu.matmul %34, %33, %cst_19 {dimension_numbers = #tpu.dot_dimension_numbers<[1], [0], [0], [1], [0, 0, 1, 1], [], []>} : vector<2x16xf32>, vector<16x256xf32>, vector<2x256xf32> -> vector<2x256xf32>
    %c0_20 = arith.constant 0 : index
    %c0_21 = arith.constant 0 : index
    %36 = vector.load %arg7[%c0_20, %c0_21] : memref<256x256xf32, #tpu.memory_space<vmem>>, vector<256x256xf32>
    %cst_22 = arith.constant dense<0.000000e+00> : vector<2x256xf32>
    %37 = tpu.matmul %35, %36, %cst_22 {dimension_numbers = #tpu.dot_dimension_numbers<[1], [0], [0], [1], [0, 0, 1, 1], [], []>} : vector<2x256xf32>, vector<256x256xf32>, vector<2x256xf32> -> vector<2x256xf32>
    %c0_23 = arith.constant 0 : index
    %c0_24 = arith.constant 0 : index
    %38 = vector.load %arg8[%c0_23, %c0_24] : memref<1x256xf32, #tpu.memory_space<vmem>>, vector<1x256xf32>
    %39 = vector.broadcast %38 : vector<1x256xf32> to vector<2x256xf32>
    %40 = arith.addf %37, %39 : vector<2x256xf32>
    %c0_25 = arith.constant 0 : index
    %c0_26 = arith.constant 0 : index
    %41 = vector.load %arg9[%c0_25, %c0_26] : memref<1x256xf32, #tpu.memory_space<vmem>>, vector<1x256xf32>
    %42 = vector.broadcast %41 : vector<1x256xf32> to vector<2x256xf32>
    %43 = arith.mulf %35, %42 : vector<2x256xf32>
    %cst_27 = arith.constant dense<0.000000e+00> : vector<2xf32>
    %44 = vector.multi_reduction <add>, %43, %cst_27 [1] : vector<2x256xf32> to vector<2xf32>
    %45 = vector.shape_cast %44 : vector<2xf32> to vector<2x1xf32>
    %cst_28 = arith.constant dense<0.000000e+00> : vector<2x16xf32>
    %46 = tpu.matmul %40, %33, %cst_28 {dimension_numbers = #tpu.dot_dimension_numbers<[1], [1], [0], [0], [0, 0, 1, 0], [], []>} : vector<2x256xf32>, vector<16x256xf32>, vector<2x16xf32> -> vector<2x16xf32>
    %c0_29 = arith.constant 0 : index
    %c0_30 = arith.constant 0 : index
    %47 = vector.load %arg16[%c0_29, %c0_30] : memref<2x16xf32, #tpu.memory_space<vmem>>, vector<2x16xf32>
    %48 = arith.mulf %46, %47 : vector<2x16xf32>
    %c0_31 = arith.constant 0 : index
    %c0_32 = arith.constant 0 : index
    %49 = vector.load %arg17[%c0_31, %c0_32] : memref<16x8xf32, #tpu.memory_space<vmem>>, vector<16x8xf32>
    %cst_33 = arith.constant dense<0.000000e+00> : vector<2x8xf32>
    %50 = tpu.matmul %48, %49, %cst_33 {dimension_numbers = #tpu.dot_dimension_numbers<[1], [0], [0], [1], [0, 0, 1, 1], [], []>} : vector<2x16xf32>, vector<16x8xf32>, vector<2x8xf32> -> vector<2x8xf32>
    %51 = vector.broadcast %45 : vector<2x1xf32> to vector<2x8xf32>
    %52 = arith.addf %50, %51 : vector<2x8xf32>
    %53 = vector.extract_strided_slice %32 {offsets = [0, 256], sizes = [16, 256], strides = [1, 1]} : vector<16x512xf32> to vector<16x256xf32>
    %c0_34 = arith.constant 0 : index
    %c0_35 = arith.constant 0 : index
    %54 = vector.load %arg10[%c0_34, %c0_35] : memref<2x16xf32, #tpu.memory_space<vmem>>, vector<2x16xf32>
    %cst_36 = arith.constant dense<0.000000e+00> : vector<2x256xf32>
    %55 = tpu.matmul %54, %53, %cst_36 {dimension_numbers = #tpu.dot_dimension_numbers<[1], [0], [0], [1], [0, 0, 1, 1], [], []>} : vector<2x16xf32>, vector<16x256xf32>, vector<2x256xf32> -> vector<2x256xf32>
    %c0_37 = arith.constant 0 : index
    %c0_38 = arith.constant 0 : index
    %56 = vector.load %arg11[%c0_37, %c0_38] : memref<256x256xf32, #tpu.memory_space<vmem>>, vector<256x256xf32>
    %cst_39 = arith.constant dense<0.000000e+00> : vector<2x256xf32>
    %57 = tpu.matmul %55, %56, %cst_39 {dimension_numbers = #tpu.dot_dimension_numbers<[1], [0], [0], [1], [0, 0, 1, 1], [], []>} : vector<2x256xf32>, vector<256x256xf32>, vector<2x256xf32> -> vector<2x256xf32>
    %c0_40 = arith.constant 0 : index
    %c0_41 = arith.constant 0 : index
    %58 = vector.load %arg12[%c0_40, %c0_41] : memref<1x256xf32, #tpu.memory_space<vmem>>, vector<1x256xf32>
    %59 = vector.broadcast %58 : vector<1x256xf32> to vector<2x256xf32>
    %60 = arith.addf %57, %59 : vector<2x256xf32>
    %c0_42 = arith.constant 0 : index
    %c0_43 = arith.constant 0 : index
    %61 = vector.load %arg13[%c0_42, %c0_43] : memref<1x256xf32, #tpu.memory_space<vmem>>, vector<1x256xf32>
    %62 = vector.broadcast %61 : vector<1x256xf32> to vector<2x256xf32>
    %63 = arith.mulf %55, %62 : vector<2x256xf32>
    %cst_44 = arith.constant dense<0.000000e+00> : vector<2xf32>
    %64 = vector.multi_reduction <add>, %63, %cst_44 [1] : vector<2x256xf32> to vector<2xf32>
    %65 = vector.shape_cast %64 : vector<2xf32> to vector<2x1xf32>
    %cst_45 = arith.constant dense<0.000000e+00> : vector<2x16xf32>
    %66 = tpu.matmul %60, %53, %cst_45 {dimension_numbers = #tpu.dot_dimension_numbers<[1], [1], [0], [0], [0, 0, 1, 0], [], []>} : vector<2x256xf32>, vector<16x256xf32>, vector<2x16xf32> -> vector<2x16xf32>
    %c0_46 = arith.constant 0 : index
    %c0_47 = arith.constant 0 : index
    %67 = vector.load %arg16[%c0_46, %c0_47] : memref<2x16xf32, #tpu.memory_space<vmem>>, vector<2x16xf32>
    %68 = arith.mulf %66, %67 : vector<2x16xf32>
    %c0_48 = arith.constant 0 : index
    %c0_49 = arith.constant 0 : index
    %69 = vector.load %arg17[%c0_48, %c0_49] : memref<16x8xf32, #tpu.memory_space<vmem>>, vector<16x8xf32>
    %cst_50 = arith.constant dense<0.000000e+00> : vector<2x8xf32>
    %70 = tpu.matmul %68, %69, %cst_50 {dimension_numbers = #tpu.dot_dimension_numbers<[1], [0], [0], [1], [0, 0, 1, 1], [], []>} : vector<2x16xf32>, vector<16x8xf32>, vector<2x8xf32> -> vector<2x8xf32>
    %71 = vector.broadcast %65 : vector<2x1xf32> to vector<2x8xf32>
    %72 = arith.addf %70, %71 : vector<2x8xf32>
    %73 = tpu.concatenate %52, %72 in 1 : vector<2x8xf32>, vector<2x8xf32> -> vector<2x16xf32>
    %c0_51 = arith.constant 0 : index
    %c0_52 = arith.constant 0 : index
    %74 = vector.load %arg14[%c0_51, %c0_52] : memref<1x16xf32, #tpu.memory_space<vmem>>, vector<1x16xf32>
    %75 = vector.broadcast %74 : vector<1x16xf32> to vector<2x16xf32>
    %76 = arith.mulf %73, %75 : vector<2x16xf32>
    %c0_53 = arith.constant 0 : index
    %c0_54 = arith.constant 0 : index
    %77 = vector.load %arg15[%c0_53, %c0_54] : memref<1x16xf32, #tpu.memory_space<vmem>>, vector<1x16xf32>
    %78 = vector.broadcast %77 : vector<1x16xf32> to vector<2x16xf32>
    %79 = arith.addf %76, %78 : vector<2x16xf32>
    %80 = arith.negf %79 : vector<2x16xf32>
    %81 = math.exp %80 : vector<2x16xf32>
    %cst_55 = arith.constant 1.000000e+00 : f32
    %82 = vector.broadcast %cst_55 : f32 to vector<2x16xf32>
    %83 = arith.addf %82, %81 : vector<2x16xf32>
    %84 = arith.divf %82, %83 : vector<2x16xf32>
    %c0_56 = arith.constant 0 : index
    %c0_57 = arith.constant 0 : index
    %85 = vector.load %arg18[%c0_56, %c0_57] : memref<16x128xf32, #tpu.memory_space<vmem>>, vector<16x128xf32>
    %cst_58 = arith.constant dense<0.000000e+00> : vector<2x128xf32>
    %86 = tpu.matmul %84, %85, %cst_58 {dimension_numbers = #tpu.dot_dimension_numbers<[1], [0], [0], [1], [0, 0, 1, 1], [], []>} : vector<2x16xf32>, vector<16x128xf32>, vector<2x128xf32> -> vector<2x128xf32>
    %c0_59 = arith.constant 0 : index
    %c0_60 = arith.constant 0 : index
    %87 = vector.load %arg34[%c0_59, %c0_60] : memref<2x128xf32, #tpu.memory_space<vmem>>, vector<2x128xf32>
    tpu.vector_store %arg34[%c0_59, %c0_60], %86 {strides = array<i32>} : memref<2x128xf32, #tpu.memory_space<vmem>>, vector<2x128xf32>,
    %cst_61 = arith.constant 5.000000e-01 : f32
    %88 = vector.broadcast %cst_61 : f32 to vector<2x16xf32>
    %89 = arith.cmpf ogt, %84, %88 : vector<2x16xf32>
    %90 = arith.extui %89 : vector<2x16xi1> to vector<2x16xi32>
    %91 = arith.sitofp %90 : vector<2x16xi32> to vector<2x16xf32>
    %c0_62 = arith.constant 0 : index
    %c0_63 = arith.constant 0 : index
    %92 = vector.load %arg19[%c0_62, %c0_63] : memref<16x128xf32, #tpu.memory_space<vmem>>, vector<16x128xf32>
    %cst_64 = arith.constant dense<0.000000e+00> : vector<2x128xf32>
    %93 = tpu.matmul %91, %92, %cst_64 {dimension_numbers = #tpu.dot_dimension_numbers<[1], [0], [0], [1], [0, 0, 1, 1], [], []>} : vector<2x16xf32>, vector<16x128xf32>, vector<2x128xf32> -> vector<2x128xf32>
    %c0_65 = arith.constant 0 : index
    %c0_66 = arith.constant 0 : index
    %94 = vector.load %arg20[%c0_65, %c0_66] : memref<16x2xf32, #tpu.memory_space<vmem>>, vector<16x2xf32>
    %cst_67 = arith.constant dense<0.000000e+00> : vector<16x128xf32>
    %95 = tpu.matmul %94, %93, %cst_67 {dimension_numbers = #tpu.dot_dimension_numbers<[1], [0], [0], [1], [0, 0, 1, 1], [], []>} : vector<16x2xf32>, vector<2x128xf32>, vector<16x128xf32> -> vector<16x128xf32>
    %c0_68 = arith.constant 0 : index
    %c0_69 = arith.constant 0 : index
    %96 = vector.load %arg21[%c0_68, %c0_69] : memref<64x128xf32, #tpu.memory_space<vmem>>, vector<64x128xf32>
    %cst_70 = arith.constant dense<0.000000e+00> : vector<16x128xf32>
    %97 = tpu.matmul %0, %96, %cst_70 {dimension_numbers = #tpu.dot_dimension_numbers<[1], [0], [0], [1], [0, 0, 1, 1], [], []>} : vector<16x64xf32>, vector<64x128xf32>, vector<16x128xf32> -> vector<16x128xf32>
    %c0_71 = arith.constant 0 : index
    %c0_72 = arith.constant 0 : index
    %98 = vector.load %arg22[%c0_71, %c0_72] : memref<64x128xf32, #tpu.memory_space<vmem>>, vector<64x128xf32>
    %cst_73 = arith.constant dense<0.000000e+00> : vector<16x128xf32>
    %99 = tpu.matmul %0, %98, %cst_73 {dimension_numbers = #tpu.dot_dimension_numbers<[1], [0], [0], [1], [0, 0, 1, 1], [], []>} : vector<16x64xf32>, vector<64x128xf32>, vector<16x128xf32> -> vector<16x128xf32>
    %cst_74 = arith.constant 5.000000e-01 : f32
    %100 = vector.broadcast %cst_74 : f32 to vector<16x128xf32>
    %101 = arith.cmpf ogt, %95, %100 : vector<16x128xf32>
    %102 = arith.select %101, %99, %97 : vector<16x128xi1>, vector<16x128xf32>
    %c0_75 = arith.constant 0 : index
    %c0_76 = arith.constant 0 : index
    %103 = vector.load %arg23[%c0_75, %c0_76] : memref<128x128xf32, #tpu.memory_space<vmem>>, vector<128x128xf32>
    %cst_77 = arith.constant dense<0.000000e+00> : vector<16x128xf32>
    %104 = tpu.matmul %102, %103, %cst_77 {dimension_numbers = #tpu.dot_dimension_numbers<[1], [0], [0], [1], [0, 0, 1, 1], [], []>} : vector<16x128xf32>, vector<128x128xf32>, vector<16x128xf32> -> vector<16x128xf32>
    %105 = arith.subf %102, %104 : vector<16x128xf32>
    %106 = arith.mulf %105, %105 : vector<16x128xf32>
    %c0_78 = arith.constant 0 : index
    %c0_79 = arith.constant 0 : index
    %107 = vector.load %arg23[%c0_78, %c0_79] : memref<128x128xf32, #tpu.memory_space<vmem>>, vector<128x128xf32>
    %cst_80 = arith.constant dense<0.000000e+00> : vector<16x128xf32>
    %108 = tpu.matmul %106, %107, %cst_80 {dimension_numbers = #tpu.dot_dimension_numbers<[1], [0], [0], [1], [0, 0, 1, 1], [], []>} : vector<16x128xf32>, vector<128x128xf32>, vector<16x128xf32> -> vector<16x128xf32>
    %cst_81 = arith.constant 9.99999974E-6 : f32
    %109 = vector.broadcast %cst_81 : f32 to vector<16x128xf32>
    %110 = arith.addf %108, %109 : vector<16x128xf32>
    %111 = math.rsqrt %110 : vector<16x128xf32>
    %112 = arith.mulf %105, %111 : vector<16x128xf32>
    %c0_82 = arith.constant 0 : index
    %c0_83 = arith.constant 0 : index
    %113 = vector.load %arg24[%c0_82, %c0_83] : memref<1x128xf32, #tpu.memory_space<vmem>>, vector<1x128xf32>
    %114 = vector.broadcast %113 : vector<1x128xf32> to vector<16x128xf32>
    %115 = arith.mulf %112, %114 : vector<16x128xf32>
    %c0_84 = arith.constant 0 : index
    %c0_85 = arith.constant 0 : index
    %116 = vector.load %arg25[%c0_84, %c0_85] : memref<1x128xf32, #tpu.memory_space<vmem>>, vector<1x128xf32>
    %117 = vector.broadcast %116 : vector<1x128xf32> to vector<16x128xf32>
    %118 = arith.addf %115, %117 : vector<16x128xf32>
    %c0_86 = arith.constant 0 : index
    %c0_87 = arith.constant 0 : index
    %119 = vector.load %arg26[%c0_86, %c0_87] : memref<128x128xf32, #tpu.memory_space<vmem>>, vector<128x128xf32>
    %cst_88 = arith.constant dense<0.000000e+00> : vector<16x128xf32>
    %120 = tpu.matmul %118, %119, %cst_88 {dimension_numbers = #tpu.dot_dimension_numbers<[1], [0], [0], [1], [0, 0, 1, 1], [], []>} : vector<16x128xf32>, vector<128x128xf32>, vector<16x128xf32> -> vector<16x128xf32>
    %c0_89 = arith.constant 0 : index
    %c0_90 = arith.constant 0 : index
    %121 = vector.load %arg27[%c0_89, %c0_90] : memref<128x128xf32, #tpu.memory_space<vmem>>, vector<128x128xf32>
    %cst_91 = arith.constant dense<0.000000e+00> : vector<16x128xf32>
    %122 = tpu.matmul %118, %121, %cst_91 {dimension_numbers = #tpu.dot_dimension_numbers<[1], [0], [0], [1], [0, 0, 1, 1], [], []>} : vector<16x128xf32>, vector<128x128xf32>, vector<16x128xf32> -> vector<16x128xf32>
    %c0_92 = arith.constant 0 : index
    %c0_93 = arith.constant 0 : index
    %123 = vector.load %arg29[%c0_92, %c0_93] : memref<16x16xf32, #tpu.memory_space<vmem>>, vector<16x16xf32>
    %cst_94 = arith.constant dense<0.000000e+00> : vector<16x128xf32>
    %124 = tpu.matmul %123, %122, %cst_94 {dimension_numbers = #tpu.dot_dimension_numbers<[1], [0], [0], [1], [0, 0, 1, 1], [], []>} : vector<16x16xf32>, vector<16x128xf32>, vector<16x128xf32> -> vector<16x128xf32>
    %c0_95 = arith.constant 0 : index
    %c0_96 = arith.constant 0 : index
    %125 = vector.load %arg30[%c0_95, %c0_96] : memref<16x16xf32, #tpu.memory_space<vmem>>, vector<16x16xf32>
    %cst_97 = arith.constant dense<0.000000e+00> : vector<16x128xf32>
    %126 = tpu.matmul %125, %122, %cst_97 {dimension_numbers = #tpu.dot_dimension_numbers<[1], [0], [0], [1], [0, 0, 1, 1], [], []>} : vector<16x16xf32>, vector<16x128xf32>, vector<16x128xf32> -> vector<16x128xf32>
    %c0_98 = arith.constant 0 : index
    %c0_99 = arith.constant 0 : index
    %127 = vector.load %arg31[%c0_98, %c0_99] : memref<1x128xf32, #tpu.memory_space<vmem>>, vector<1x128xf32>
    %128 = vector.broadcast %127 : vector<1x128xf32> to vector<16x128xf32>
    %129 = arith.mulf %124, %128 : vector<16x128xf32>
    %130 = arith.addf %120, %129 : vector<16x128xf32>
    %c0_100 = arith.constant 0 : index
    %c0_101 = arith.constant 0 : index
    %131 = vector.load %arg32[%c0_100, %c0_101] : memref<1x128xf32, #tpu.memory_space<vmem>>, vector<1x128xf32>
    %132 = vector.broadcast %131 : vector<1x128xf32> to vector<16x128xf32>
    %133 = arith.mulf %126, %132 : vector<16x128xf32>
    %134 = arith.addf %130, %133 : vector<16x128xf32>
    %c0_102 = arith.constant 0 : index
    %c0_103 = arith.constant 0 : index
    %135 = vector.load %arg28[%c0_102, %c0_103] : memref<1x128xf32, #tpu.memory_space<vmem>>, vector<1x128xf32>
    %136 = vector.broadcast %135 : vector<1x128xf32> to vector<16x128xf32>
    %137 = arith.addf %134, %136 : vector<16x128xf32>
    %cst_104 = arith.constant 0.000000e+00 : f32
    %138 = vector.broadcast %cst_104 : f32 to vector<16x128xf32>
    %139 = arith.maximumf %137, %138 : vector<16x128xf32>
    %c0_105 = arith.constant 0 : index
    %c0_106 = arith.constant 0 : index
    %140 = vector.load %arg33[%c0_105, %c0_106] : memref<16x128xf32, #tpu.memory_space<vmem>>, vector<16x128xf32>
    tpu.vector_store %arg33[%c0_105, %c0_106], %139 {strides = array<i32>} : memref<16x128xf32, #tpu.memory_space<vmem>>, vector<16x128xf32>,
    return
  }
}

</mosaic_0001>

<bundles_post_ra>
// kernel: _forward_impl.1
= control target key start
LH: loop header
LB: loop body
LE: loop exit
PB: predicated region body
PF: predicated region fallthrough
CT: control target
= control target key end

     0   :  { %s3915_s6 = smov 1   ;;  %s3916_s10 = smov 2   ;;  %s4454_s0 = inlined_call_operand.smem [shape: u32[35], index: -1, kind: input, shape index: {}] }
   0x1   :  { %s3990_s5 = sld [smem:[%s4454_s0]]   ;;  %s3917_s14 = smov 3  }
   0x2   :  { %s3995_s9 = sld [smem:[%s4454_s0 + %s3915_s6]]   ;;  %s3918_s18 = smov 4  }
   0x3   :  { %s4000_s13 = sld [smem:[%s4454_s0 + %s3916_s10]]   ;;  %s3919_s22 = smov 5  }
   0x4   :  { %s4005_s17 = sld [smem:[%s4454_s0 + %s3917_s14]]   ;;  %s3920_s26 = smov 6  }
   0x5   :  { %s4010_s21 = sld [smem:[%s4454_s0 + %s3918_s18]]   ;;  %s3921_s30 = smov 7  }
   0x6   :  { %s4015_s25 = sld [smem:[%s4454_s0 + %s3919_s22]]   ;;  %s3922_s4 = smov 8  }
   0x7   :  { %4471 = sst [smem:[#allocation52_spill]] %s3990_s5  ;;  %s3923_s10 = smov 9  }
   0x8   :  { %4472 = sst [smem:[#allocation53_spill]] %s3995_s9  ;;  %s3924_s15 = smov 10  }
   0x9   :  { %4473 = sst [smem:[#allocation54_spill]] %s4000_s13  ;;  %s3925_s20 = smov 11  }
   0xa   :  { %s4020_s29 = sld [smem:[%s4454_s0 + %s3920_s26]]   ;;  %s3926_s26 = smov 12  }
   0xb   :  { %s4025_s3 = sld [smem:[%s4454_s0 + %s3921_s30]]   ;;  %s3927_s1 = smov 13  }
   0xc   :  { %s4030_s8 = sld [smem:[%s4454_s0 + %s3922_s4]]   ;;  %s3928_s7 = smov 14  }
   0xd   :  { %s4035_s14 = sld [smem:[%s4454_s0 + %s3923_s10]]   ;;  %s3930_s22 = smov 16  }
   0xe   :  { %s4040_s19 = sld [smem:[%s4454_s0 + %s3924_s15]]   ;;  %s3929_s15 = smov 15  }
   0xf   :  { %s4045_s24 = sld [smem:[%s4454_s0 + %s3925_s20]]   ;;  %s3931_s28 = smov 17  }
  0x10   :  { %s4050_s30 = sld [smem:[%s4454_s0 + %s3926_s26]]  }
  0x11   :  { %4474 = sst [smem:[#allocation55_spill]] %s4025_s3 }
  0x12   :  { %s4055_s6 = sld [smem:[%s4454_s0 + %s3927_s1]]  }
  0x13   :  { %s4060_s12 = sld [smem:[%s4454_s0 + %s3928_s7]]   ;;  %s3932_s7 = smov 18  }
  0x14   :  { %4475 = sst [smem:[#allocation56_spill]] %s4040_s19 }
  0x15   :  { %s4065_s20 = sld [smem:[%s4454_s0 + %s3929_s15]]   ;;  %s3933_s15 = smov 19  }
  0x16   :  { %4476 = sst [smem:[#allocation57_spill]] %s4050_s30 }
  0x17   :  { %s4070_s27 = sld [smem:[%s4454_s0 + %s3930_s22]]   ;;  %s3934_s22 = smov 20  }
  0x18   :  { %s4075_s4 = sld [smem:[%s4454_s0 + %s3931_s28]]   ;;  %s3935_s28 = smov 21  }
  0x19   :  { %4477 = sst [smem:[#allocation58_spill]] %s4060_s12 }
  0x1a   :  { %s4080_s5 = sld [smem:[%s4454_s0 + %s3932_s7]]   ;;  %s3936_s7 = smov 22  }
  0x1b   :  { %s4085_s13 = sld [smem:[%s4454_s0 + %s3933_s15]]   ;;  %s3937_s15 = smov 23  }
  0x1c   :  { %s4090_s3 = sld [smem:[%s4454_s0 + %s3934_s22]]   ;;  %s3938_s22 = smov 24  }
  0x1d   :  { %4478 = sst [smem:[#allocation59_spill]] %s4070_s27 }
  0x1e   :  { %4479 = sst [smem:[#allocation60_spill]] %s4075_s4 }
  0x1f   :  { %s4095_s4 = sld [smem:[%s4454_s0 + %s3935_s28]]   ;;  %s3939_s28 = smov 25  }
  0x20   :  { %s4100_s9 = sld [smem:[%s4454_s0 + %s3936_s7]]   ;;  %s3940_s7 = smov 26  }
  0x21   :  { %4480 = sst [smem:[#allocation61_spill]] %s4085_s13 }
  0x22   :  { %4481 = sst [smem:[#allocation62_spill]] %s4090_s3 }
  0x23   :  { %s4105_s13 = sld [smem:[%s4454_s0 + %s3937_s15]]   ;;  %s3941_s15 = smov 27  }
  0x24   :  { %s4110_s3 = sld [smem:[%s4454_s0 + %s3938_s22]]   ;;  %s3942_s22 = smov 28  }
  0x25   :  { %s4115_s27 = sld [smem:[%s4454_s0 + %s3939_s28]]   ;;  %s3943_s28 = smov 29  }
  0x26   :  { %4482 = sst [smem:[#allocation63_spill]] %s4100_s9 }
  0x27   :  { %s4120_s9 = sld [smem:[%s4454_s0 + %s3940_s7]]   ;;  %s3944_s7 = smov 30  }
  0x28   :  { %s4130_s12 = sld [smem:[%s4454_s0 + %s3942_s22]]   ;;  %s3946_s22 = smov 32  }
  0x29   :  { %4483 = sst [smem:[#allocation64_spill]] %s4105_s13 }
  0x2a   :  { %s4125_s13 = sld [smem:[%s4454_s0 + %s3941_s15]]   ;;  %s3945_s15 = smov 31  }
  0x2b   :  { %4484 = sst [smem:[#allocation65_spill]] %s4115_s27 }
  0x2c   :  { %s4135_s27 = sld [smem:[%s4454_s0 + %s3943_s28]]   ;;  %s3947_s28 = smov 33  }
  0x2d   :  { %s4140_s30 = sld [smem:[%s4454_s0 + %s3944_s7]]   ;;  %s3948_s7 = smov 34  }
  0x2e   :  { %s4150_s19 = sld [smem:[%s4454_s0 + %s3946_s22]]  }
  0x30   :  { %4485 = sst [smem:[#allocation66_spill]] %s4125_s13 }
  0x31   :  { %s4145_s13 = sld [smem:[%s4454_s0 + %s3945_s15]]  }
  0x32   :  { %4486 = sst [smem:[#allocation67_spill]] %s4135_s27 }
  0x33   :  { %4487 = sst [smem:[#allocation68_spill]] %s4140_s30 }
  0x34   :  { %s4155_s27 = sld [smem:[%s4454_s0 + %s3947_s28]]  }
  0x35   :  { %s4160_s30 = sld [smem:[%s4454_s0 + %s3948_s7]]  }
  0x36   :  { %75 = vsyncpa [#allocation3], 0 }
  0x37   :  { %76 = vsyncpa [#allocation5], 0 }
  0x38   :  { %77 = vsyncpa [#allocation8], 0 }
  0x39   :  { %78 = vsyncpa [#allocation11], 0 }
  0x3a   :  { %79 = vsyncpa [#allocation14], 0 }
  0x3b   :  { %80 = vsyncpa [#allocation17], 0 }
  0x3c   :  { %81 = vsyncpa [#allocation20], 0 }
  0x3d   :  { %82 = vsyncpa [#allocation23], 0 }
  0x3e   :  { %83 = vsyncpa [#allocation26], 0 }
  0x3f   :  { %84 = vsyncpa [#allocation29], 0 }
  0x40   :  { %85 = vsyncpa [#allocation32], 0 }
  0x41   :  { %86 = vsyncpa [#allocation35], 0 }
  0x42   :  { %87 = vsyncpa [#allocation38], 0  ;;  %s3949_s15 = smov [#allocation4]   ;;  %s3361_s0 = scalar_lea.hbm %s4010_s21, 4096 }
  0x43   :  { %s109_s16 = sshll.u32 %s3949_s15, 4  ;;  %p3362_p0 = scmp.ne.s32.totalorder %s4010_s21, %s3361_s0  ;;  %s110_s16 = int_to_ptr.vmem [resolvable:$true] %s109_s16 }
  0x44   :  { %p3365_p1 = scmp.lt.u32.totalorder %s3361_s0, %s4010_s21 }
  0x46   :  { %p3367_p2 = pnand %p3365_p1, %p3362_p0 }
  0x48   :  { %3370 = shalt.err (!%p3367_p2)
}
  0x49   :  { %s3371_s18 = scalar_lea.vmem %s110_s16, 4096  ;;  %p3376_p4 = scmp.lt.s32.totalorder %s110_s16, %s110_s16 }
  0x4a   :  { %p3372_p3 = scmp.ne.s32.totalorder %s110_s16, %s3371_s18  ;;  %p3377_p5 = scmp.lt.s32.totalorder %s3371_s18, %s3371_s18 }
  0x4c   :  { %p3378_p6 = por %p3377_p5, %p3376_p4 }
  0x4e   :  { %p3379_p7 = pnand %p3378_p6, %p3372_p3 }
  0x50   :  { %3382 = shalt.err (!%p3379_p7)
}
  0x51   :  { %s3950_s22 = smov 512   ;;  %s3951_s23 = smov 32  }
  0x52   :  { %115 = dma.hbm_to_vmem [thread:$0]  %s4010_s21, 4096, %s110_s16, [#allocation5], %s3950_s22, %s3950_s22, %s3951_s23  }
  0x53   :  { %s3952_s26 = smov [#allocation7]   ;;  %s3953_s1 = smov [#allocation10]  }
  0x54   :  { %s132_s28 = sshll.u32 %s3952_s26, 4  ;;  %s154_s2 = sshll.u32 %s3953_s1, 4  ;;  %s133_s28 = int_to_ptr.vmem [resolvable:$true] %s132_s28  ;;  %s155_s2 = int_to_ptr.vmem [resolvable:$true] %s154_s2 }
  0x55   :  { %s3383_s7 = scalar_lea.hbm %s4020_s29, 32 }
  0x56   :  { %p3384_p8 = scmp.ne.s32.totalorder %s4020_s29, %s3383_s7  ;;  %p3387_p9 = scmp.lt.u32.totalorder %s3383_s7, %s4020_s29 }
  0x58   :  { %p3389_p10 = pnand %p3387_p9, %p3384_p8 }
  0x5a   :  { %3392 = shalt.err (!%p3389_p10)
}
  0x5b   :  { %s3393_s10 = scalar_lea.vmem %s133_s28, 32  ;;  %p3398_p12 = scmp.lt.s32.totalorder %s133_s28, %s133_s28 }
  0x5c   :  { %p3394_p11 = scmp.ne.s32.totalorder %s133_s28, %s3393_s10  ;;  %p3399_p13 = scmp.lt.s32.totalorder %s3393_s10, %s3393_s10 }
  0x5e   :  { %p3400_p0 = por %p3399_p13, %p3398_p12 }
  0x60   :  { %p3401_p1 = pnand %p3400_p0, %p3394_p11 }
  0x62   :  { %3404 = shalt.err (!%p3401_p1)
}
  0x63   :  { %135 = dma.hbm_to_vmem [thread:$0]  %s4020_s29, 32, %s133_s28, [#allocation8]  }
  0x64   :  { %s3405_s21 = scalar_lea.hbm %s4035_s14, 32 }
  0x65   :  { %p3406_p2 = scmp.ne.s32.totalorder %s4035_s14, %s3405_s21  ;;  %p3409_p3 = scmp.lt.u32.totalorder %s3405_s21, %s4035_s14 }
  0x67   :  { %p3411_p4 = pnand %p3409_p3, %p3406_p2 }
  0x69   :  { %3414 = shalt.err (!%p3411_p4)
}
  0x6a   :  { %s3415_s11 = scalar_lea.vmem %s155_s2, 32  ;;  %p3420_p6 = scmp.lt.s32.totalorder %s155_s2, %s155_s2 }
  0x6b   :  { %p3416_p5 = scmp.ne.s32.totalorder %s155_s2, %s3415_s11  ;;  %p3421_p7 = scmp.lt.s32.totalorder %s3415_s11, %s3415_s11 }
  0x6d   :  { %p3422_p8 = por %p3421_p7, %p3420_p6 }
  0x6f   :  { %p3423_p9 = pnand %p3422_p8, %p3416_p5 }
  0x71   :  { %3426 = shalt.err (!%p3423_p9)
}
  0x72   :  { %157 = dma.hbm_to_vmem [thread:$0]  %s4035_s14, 32, %s155_s2, [#allocation11]  }
  0x73   :  { %s3954_s15 = smov [#allocation13]   ;;  %s3427_s16 = scalar_lea.hbm %s4045_s24, 8192 }
  0x74   :  { %s173_s29 = sshll.u32 %s3954_s15, 4  ;;  %p3428_p10 = scmp.ne.s32.totalorder %s4045_s24, %s3427_s16  ;;  %s174_s29 = int_to_ptr.vmem [resolvable:$true] %s173_s29 }
  0x75   :  { %p3431_p11 = scmp.lt.u32.totalorder %s3427_s16, %s4045_s24 }
  0x77   :  { %p3433_p12 = pnand %p3431_p11, %p3428_p10 }
  0x79   :  { %3436 = shalt.err (!%p3433_p12)
}
  0x7a   :  { %s3437_s0 = scalar_lea.vmem %s174_s29, 8192  ;;  %p3442_p0 = scmp.lt.s32.totalorder %s174_s29, %s174_s29 }
  0x7b   :  { %p3438_p13 = scmp.ne.s32.totalorder %s174_s29, %s3437_s0  ;;  %p3443_p1 = scmp.lt.s32.totalorder %s3437_s0, %s3437_s0 }
  0x7d   :  { %p3444_p2 = por %p3443_p1, %p3442_p0 }
  0x7f   :  { %p3445_p3 = pnand %p3444_p2, %p3438_p13 }
  0x81   :  { %3448 = shalt.err (!%p3445_p3)
}
  0x82   :  { %s3955_s18 = smov 256   ;;  %s3956_s14 = smov 16  }
  0x83   :  { %179 = dma.hbm_to_vmem [thread:$0]  %s4045_s24, 8192, %s174_s29, [#allocation14], %s3955_s18, %s3955_s18, %s3956_s14  }
  0x84   :  { %s3957_s22 = smov [#allocation16]   ;;  %s3958_s26 = smov [#allocation19]  }
  0x85   :  { %s196_s23 = sshll.u32 %s3957_s22, 4  ;;  %s216_s28 = sshll.u32 %s3958_s26, 4  ;;  %s197_s23 = int_to_ptr.vmem [resolvable:$true] %s196_s23  ;;  %s217_s28 = int_to_ptr.vmem [resolvable:$true] %s216_s28 }
  0x86   :  { %s3449_s1 = scalar_lea.hbm %s4055_s6, 32 }
  0x87   :  { %p3450_p4 = scmp.ne.s32.totalorder %s4055_s6, %s3449_s1  ;;  %p3453_p5 = scmp.lt.u32.totalorder %s3449_s1, %s4055_s6 }
  0x89   :  { %p3455_p6 = pnand %p3453_p5, %p3450_p4 }
  0x8b   :  { %3458 = shalt.err (!%p3455_p6)
}
  0x8c   :  { %s3459_s2 = scalar_lea.vmem %s197_s23, 32  ;;  %p3464_p8 = scmp.lt.s32.totalorder %s197_s23, %s197_s23 }
  0x8d   :  { %p3460_p7 = scmp.ne.s32.totalorder %s197_s23, %s3459_s2  ;;  %p3465_p9 = scmp.lt.s32.totalorder %s3459_s2, %s3459_s2 }
  0x8f   :  { %p3466_p10 = por %p3465_p9, %p3464_p8 }
  0x91   :  { %p3467_p11 = pnand %p3466_p10, %p3460_p7 }
  0x93   :  { %3470 = shalt.err (!%p3467_p11)
}
  0x94   :  { %199 = dma.hbm_to_vmem [thread:$0]  %s4055_s6, 32, %s197_s23, [#allocation17]  }
  0x95   :  { %s3471_s24 = scalar_lea.hbm %s4065_s20, 16 }
  0x96   :  { %p3472_p12 = scmp.ne.s32.totalorder %s4065_s20, %s3471_s24  ;;  %p3475_p13 = scmp.lt.u32.totalorder %s3471_s24, %s4065_s20 }
  0x98   :  { %p3477_p0 = pnand %p3475_p13, %p3472_p12 }
  0x9a   :  { %3480 = shalt.err (!%p3477_p0)
}
  0x9b   :  { %s3481_s7 = scalar_lea.vmem %s217_s28, 16  ;;  %s3485_s10 = scalar_lea.vmem %s217_s28, 32 }
  0x9c   :  { %p3482_p1 = scmp.ne.s32.totalorder %s217_s28, %s3481_s7  ;;  %p3486_p2 = scmp.lt.s32.totalorder %s217_s28, %s217_s28 }
  0x9d   :  { %p3487_p3 = scmp.lt.s32.totalorder %s3485_s10, %s3481_s7 }
  0x9f   :  { %p3488_p4 = por %p3487_p3, %p3486_p2 }
  0xa1   :  { %p3489_p5 = pnand %p3488_p4, %p3482_p1 }
  0xa3   :  { %3492 = shalt.err (!%p3489_p5)
}
  0xa4   :  { %219 = dma.hbm_to_vmem [thread:$0]  %s4065_s20, 16, %s217_s28, [#allocation20]  }
  0xa5   :  { %s3959_s21 = smov [#allocation22]   ;;  %s3493_s11 = scalar_lea.hbm %s4080_s5, 256 }
  0xa6   :  { %s237_s6 = sshll.u32 %s3959_s21, 4  ;;  %p3494_p6 = scmp.ne.s32.totalorder %s4080_s5, %s3493_s11  ;;  %s238_s6 = int_to_ptr.vmem [resolvable:$true] %s237_s6 }
  0xa7   :  { %p3497_p7 = scmp.lt.u32.totalorder %s3493_s11, %s4080_s5 }
  0xa9   :  { %p3499_p8 = pnand %p3497_p7, %p3494_p6 }
  0xab   :  { %3502 = shalt.err (!%p3499_p8)
}
  0xac   :  { %s3503_s15 = scalar_lea.vmem %s238_s6, 256  ;;  %p3508_p10 = scmp.lt.s32.totalorder %s238_s6, %s238_s6 }
  0xad   :  { %p3504_p9 = scmp.ne.s32.totalorder %s238_s6, %s3503_s15  ;;  %p3509_p11 = scmp.lt.s32.totalorder %s3503_s15, %s3503_s15 }
  0xaf   :  { %p3510_p12 = por %p3509_p11, %p3508_p10 }
  0xb1   :  { %p3511_p13 = pnand %p3510_p12, %p3504_p9 }
  0xb3   :  { %3514 = shalt.err (!%p3511_p13)
}
  0xb4   :  { %s3960_s29 = smov 128   ;;  %s3961_s20 = smov 8  }
  0xb5   :  { %243 = dma.hbm_to_vmem [thread:$0]  %s4080_s5, 256, %s238_s6, [#allocation23], %s3960_s29, %s3960_s29, %s3961_s20  }
  0xb6   :  { %s3962_s16 = smov [#allocation25]   ;;  %s3963_s18 = smov [#allocation28]  }
  0xb7   :  { %s263_s0 = sshll.u32 %s3962_s16, 4  ;;  %s290_s14 = sshll.u32 %s3963_s18, 4  ;;  %s264_s0 = int_to_ptr.vmem [resolvable:$true] %s263_s0  ;;  %s291_s14 = int_to_ptr.vmem [resolvable:$true] %s290_s14 }
  0xb8   :  { %s3515_s22 = scalar_lea.hbm %s4095_s4, 1024 }
  0xb9   :  { %p3516_p0 = scmp.ne.s32.totalorder %s4095_s4, %s3515_s22  ;;  %p3519_p1 = scmp.lt.u32.totalorder %s3515_s22, %s4095_s4 }
  0xbb   :  { %p3521_p2 = pnand %p3519_p1, %p3516_p0 }
  0xbd   :  { %3524 = shalt.err (!%p3521_p2)
}
  0xbe   :  { %s3525_s23 = scalar_lea.vmem %s264_s0, 1024  ;;  %p3530_p4 = scmp.lt.s32.totalorder %s264_s0, %s264_s0 }
  0xbf   :  { %p3526_p3 = scmp.ne.s32.totalorder %s264_s0, %s3525_s23  ;;  %p3531_p5 = scmp.lt.s32.totalorder %s3525_s23, %s3525_s23 }
  0xc1   :  { %p3532_p6 = por %p3531_p5, %p3530_p4 }
  0xc3   :  { %p3533_p7 = pnand %p3532_p6, %p3526_p3 }
  0xc5   :  { %3536 = shalt.err (!%p3533_p7)
}
  0xc6   :  { %269 = dma.hbm_to_vmem [thread:$0]  %s4095_s4, 1024, %s264_s0, [#allocation26], %s3960_s29, %s3960_s29, %s3961_s20  }
  0xc7   :  { %s3537_s5 = scalar_lea.hbm %s4110_s3, 16 }
  0xc8   :  { %p3538_p8 = scmp.ne.s32.totalorder %s4110_s3, %s3537_s5  ;;  %p3541_p9 = scmp.lt.u32.totalorder %s3537_s5, %s4110_s3 }
  0xca   :  { %p3543_p10 = pnand %p3541_p9, %p3538_p8 }
  0xcc   :  { %3546 = shalt.err (!%p3543_p10)
}
  0xcd   :  { %s3547_s26 = scalar_lea.vmem %s291_s14, 16  ;;  %s3551_s28 = scalar_lea.vmem %s291_s14, 32 }
  0xce   :  { %p3548_p11 = scmp.ne.s32.totalorder %s291_s14, %s3547_s26  ;;  %p3552_p12 = scmp.lt.s32.totalorder %s291_s14, %s291_s14 }
  0xcf   :  { %p3553_p13 = scmp.lt.s32.totalorder %s3551_s28, %s3547_s26 }
  0xd1   :  { %p3554_p0 = por %p3553_p13, %p3552_p12 }
  0xd3   :  { %p3555_p1 = pnand %p3554_p0, %p3548_p11 }
  0xd5   :  { %3558 = shalt.err (!%p3555_p1)
}
  0xd6   :  { %293 = dma.hbm_to_vmem [thread:$0]  %s4110_s3, 16, %s291_s14, [#allocation29]  }
  0xd7   :  { %s3964_s4 = smov [#allocation31]   ;;  %s3965_s2 = smov [#allocation34]  }
  0xd8   :  { %s309_s1 = sshll.u32 %s3964_s4, 4  ;;  %s334_s24 = sshll.u32 %s3965_s2, 4  ;;  %s310_s1 = int_to_ptr.vmem [resolvable:$true] %s309_s1  ;;  %s335_s24 = int_to_ptr.vmem [resolvable:$true] %s334_s24 }
  0xd9   :  { %s3559_s7 = scalar_lea.hbm %s4120_s9, 2048 }
  0xda   :  { %p3560_p2 = scmp.ne.s32.totalorder %s4120_s9, %s3559_s7  ;;  %p3563_p3 = scmp.lt.u32.totalorder %s3559_s7, %s4120_s9 }
  0xdc   :  { %p3565_p4 = pnand %p3563_p3, %p3560_p2 }
  0xde   :  { %3568 = shalt.err (!%p3565_p4)
}
  0xdf   :  { %s3569_s10 = scalar_lea.vmem %s310_s1, 2048  ;;  %p3574_p6 = scmp.lt.s32.totalorder %s310_s1, %s310_s1 }
  0xe0   :  { %p3570_p5 = scmp.ne.s32.totalorder %s310_s1, %s3569_s10  ;;  %p3575_p7 = scmp.lt.s32.totalorder %s3569_s10, %s3569_s10 }
  0xe2   :  { %p3576_p8 = por %p3575_p7, %p3574_p6 }
  0xe4   :  { %p3577_p9 = pnand %p3576_p8, %p3570_p5 }
  0xe6   :  { %3580 = shalt.err (!%p3577_p9)
}
  0xe7   :  { %315 = dma.hbm_to_vmem [thread:$0]  %s4120_s9, 2048, %s310_s1, [#allocation32], %s3960_s29, %s3960_s29, %s3961_s20  }
  0xe8   :  { %s3581_s3 = scalar_lea.hbm %s4130_s12, 16 }
  0xe9   :  { %p3582_p10 = scmp.ne.s32.totalorder %s4130_s12, %s3581_s3  ;;  %p3585_p11 = scmp.lt.u32.totalorder %s3581_s3, %s4130_s12 }
  0xeb   :  { %p3587_p12 = pnand %p3585_p11, %p3582_p10 }
  0xed   :  { %3590 = shalt.err (!%p3587_p12)
}
  0xee   :  { %s3591_s21 = scalar_lea.vmem %s335_s24, 16  ;;  %s3595_s6 = scalar_lea.vmem %s335_s24, 32 }
  0xef   :  { %p3592_p13 = scmp.ne.s32.totalorder %s335_s24, %s3591_s21  ;;  %p3596_p0 = scmp.lt.s32.totalorder %s335_s24, %s335_s24 }
  0xf0   :  { %p3597_p1 = scmp.lt.s32.totalorder %s3595_s6, %s3591_s21 }
  0xf2   :  { %p3598_p2 = por %p3597_p1, %p3596_p0 }
  0xf4   :  { %p3599_p3 = pnand %p3598_p2, %p3592_p13 }
  0xf6   :  { %3602 = shalt.err (!%p3599_p3)
}
  0xf7   :  { %337 = dma.hbm_to_vmem [thread:$0]  %s4130_s12, 16, %s335_s24, [#allocation35]  }
  0xf8   :  { %s3966_s9 = smov [#allocation2]   ;;  %s3967_s15 = smov [#allocation6]  }
  0xf9   :  { %s100_s11 = sshll.u32 %s3966_s9, 4  ;;  %s122_s16 = sshll.u32 %s3967_s15, 4  ;;  %s101_s11 = int_to_ptr.vmem [resolvable:$true] %s100_s11  ;;  %s123_s16 = int_to_ptr.vmem [resolvable:$true] %s122_s16 }
  0xfa   :  { %s3603_s0 = scalar_lea.hbm %s4005_s17, 16 }
  0xfb   :  { %p3604_p4 = scmp.ne.s32.totalorder %s4005_s17, %s3603_s0  ;;  %p3607_p5 = scmp.lt.u32.totalorder %s3603_s0, %s4005_s17 }
  0xfd   :  { %p3609_p6 = pnand %p3607_p5, %p3604_p4 }
  0xff   :  { %3612 = shalt.err (!%p3609_p6)
}
 0x100   :  { %s3613_s18 = scalar_lea.vmem %s101_s11, 16  ;;  %s3617_s14 = scalar_lea.vmem %s101_s11, 32 }
 0x101   :  { %p3614_p7 = scmp.ne.s32.totalorder %s101_s11, %s3613_s18  ;;  %p3618_p8 = scmp.lt.s32.totalorder %s101_s11, %s101_s11 }
 0x102   :  { %p3619_p9 = scmp.lt.s32.totalorder %s3617_s14, %s3613_s18 }
 0x104   :  { %p3620_p10 = por %p3619_p9, %p3618_p8 }
 0x106   :  { %p3621_p11 = pnand %p3620_p10, %p3614_p7 }
 0x108   :  { %3624 = shalt.err (!%p3621_p11)
}
 0x109   :  { %103 = dma.hbm_to_vmem [thread:$0]  %s4005_s17, 16, %s101_s11, [#allocation3]  }
 0x10a   :  { %s3625_s12 = scalar_lea.hbm %s4015_s25, 64 }
 0x10b   :  { %p3626_p12 = scmp.ne.s32.totalorder %s4015_s25, %s3625_s12  ;;  %p3629_p13 = scmp.lt.u32.totalorder %s3625_s12, %s4015_s25 }
 0x10d   :  { %p3631_p0 = pnand %p3629_p13, %p3626_p12 }
 0x10f   :  { %3634 = shalt.err (!%p3631_p0)
}
 0x110   :  { %s3635_s22 = scalar_lea.vmem %s123_s16, 64  ;;  %p3640_p2 = scmp.lt.s32.totalorder %s123_s16, %s123_s16 }
 0x111   :  { %p3636_p1 = scmp.ne.s32.totalorder %s123_s16, %s3635_s22  ;;  %p3641_p3 = scmp.lt.s32.totalorder %s3635_s22, %s3635_s22 }
 0x113   :  { %p3642_p4 = por %p3641_p3, %p3640_p2 }
 0x115   :  { %p3643_p5 = pnand %p3642_p4, %p3636_p1 }
 0x117   :  { %3646 = shalt.err (!%p3643_p5)
}
 0x118   :  { %125 = dma.hbm_to_vmem [thread:$0]  %s4015_s25, 64, %s123_s16, [#allocation5]  }
 0x119   :  { %s3968_s23 = smov [#allocation9]   ;;  %s3969_s5 = smov [#allocation12]  }
 0x11a   :  { %s144_s17 = sshll.u32 %s3968_s23, 4  ;;  %s164_s26 = sshll.u32 %s3969_s5, 4  ;;  %s145_s17 = int_to_ptr.vmem [resolvable:$true] %s144_s17  ;;  %s165_s26 = int_to_ptr.vmem [resolvable:$true] %s164_s26 }
 0x11b   :  { %s3647_s28 = scalar_lea.hbm %s4030_s8, 32 }
 0x11c   :  { %p3648_p6 = scmp.ne.s32.totalorder %s4030_s8, %s3647_s28  ;;  %p3651_p7 = scmp.lt.u32.totalorder %s3647_s28, %s4030_s8 }
 0x11e   :  { %p3653_p8 = pnand %p3651_p7, %p3648_p6 }
 0x120   :  { %3656 = shalt.err (!%p3653_p8)
}
 0x121   :  { %s3657_s4 = scalar_lea.vmem %s145_s17, 32  ;;  %p3662_p10 = scmp.lt.s32.totalorder %s145_s17, %s145_s17 }
 0x122   :  { %p3658_p9 = scmp.ne.s32.totalorder %s145_s17, %s3657_s4  ;;  %p3663_p11 = scmp.lt.s32.totalorder %s3657_s4, %s3657_s4 }
 0x124   :  { %p3664_p12 = por %p3663_p11, %p3662_p10 }
 0x126   :  { %p3665_p13 = pnand %p3664_p12, %p3658_p9 }
 0x128   :  { %3668 = shalt.err (!%p3665_p13)
}
 0x129   :  { %s4488_s1 = sld [smem:[#allocation56_spill]] }
 0x12a   :  { %147 = dma.hbm_to_vmem [thread:$0]  %s4030_s8, 32, %s145_s17, [#allocation8]  }
 0x12f   :  { %s3669_s25 = scalar_lea.hbm %s4488_s1, 32 }
 0x130   :  { %p3670_p0 = scmp.ne.s32.totalorder %s4488_s1, %s3669_s25  ;;  %p3673_p1 = scmp.lt.u32.totalorder %s3669_s25, %s4488_s1 }
 0x132   :  { %p3675_p2 = pnand %p3673_p1, %p3670_p0 }
 0x134   :  { %3678 = shalt.err (!%p3675_p2)
}
 0x135   :  { %s3679_s2 = scalar_lea.vmem %s165_s26, 32  ;;  %p3684_p4 = scmp.lt.s32.totalorder %s165_s26, %s165_s26 }
 0x136   :  { %p3680_p3 = scmp.ne.s32.totalorder %s165_s26, %s3679_s2  ;;  %p3685_p5 = scmp.lt.s32.totalorder %s3679_s2, %s3679_s2 }
 0x138   :  { %p3686_p6 = por %p3685_p5, %p3684_p4 }
 0x13a   :  { %p3687_p7 = pnand %p3686_p6, %p3680_p3 }
 0x13c   :  { %3690 = shalt.err (!%p3687_p7)
}
 0x13d   :  { %s4489_s24 = sld [smem:[#allocation57_spill]]  ;;  %s3970_s7 = smov [#allocation15]  }
 0x13e   :  { %167 = dma.hbm_to_vmem [thread:$0]  %s4488_s1, 32, %s165_s26, [#allocation11]  }
 0x13f   :  { %s186_s8 = sshll.u32 %s3970_s7, 4  ;;  %s3971_s10 = smov [#allocation18]   ;;  %s187_s8 = int_to_ptr.vmem [resolvable:$true] %s186_s8 }
 0x140   :  { %s206_s3 = sshll.u32 %s3971_s10, 4  ;;  %s207_s3 = int_to_ptr.vmem [resolvable:$true] %s206_s3 }
 0x143   :  { %s3691_s21 = scalar_lea.hbm %s4489_s24, 32 }
 0x144   :  { %p3692_p8 = scmp.ne.s32.totalorder %s4489_s24, %s3691_s21  ;;  %p3695_p9 = scmp.lt.u32.totalorder %s3691_s21, %s4489_s24 }
 0x146   :  { %p3697_p10 = pnand %p3695_p9, %p3692_p8 }
 0x148   :  { %3700 = shalt.err (!%p3697_p10)
}
 0x149   :  { %s3701_s6 = scalar_lea.vmem %s187_s8, 32  ;;  %p3706_p12 = scmp.lt.s32.totalorder %s187_s8, %s187_s8 }
 0x14a   :  { %p3702_p11 = scmp.ne.s32.totalorder %s187_s8, %s3701_s6  ;;  %p3707_p13 = scmp.lt.s32.totalorder %s3701_s6, %s3701_s6 }
 0x14c   :  { %p3708_p0 = por %p3707_p13, %p3706_p12 }
 0x14e   :  { %p3709_p1 = pnand %p3708_p0, %p3702_p11 }
 0x150   :  { %3712 = shalt.err (!%p3709_p1)
}
 0x151   :  { %s4490_s9 = sld [smem:[#allocation58_spill]] }
 0x152   :  { %189 = dma.hbm_to_vmem [thread:$0]  %s4489_s24, 32, %s187_s8, [#allocation14]  }
 0x157   :  { %s3713_s11 = scalar_lea.hbm %s4490_s9, 16 }
 0x158   :  { %p3714_p2 = scmp.ne.s32.totalorder %s4490_s9, %s3713_s11  ;;  %p3717_p3 = scmp.lt.u32.totalorder %s3713_s11, %s4490_s9 }
 0x15a   :  { %p3719_p4 = pnand %p3717_p3, %p3714_p2 }
 0x15c   :  { %3722 = shalt.err (!%p3719_p4)
}
 0x15d   :  { %s3723_s15 = scalar_lea.vmem %s207_s3, 16  ;;  %s3727_s16 = scalar_lea.vmem %s207_s3, 32 }
 0x15e   :  { %p3724_p5 = scmp.ne.s32.totalorder %s207_s3, %s3723_s15  ;;  %p3728_p6 = scmp.lt.s32.totalorder %s207_s3, %s207_s3 }
 0x15f   :  { %p3729_p7 = scmp.lt.s32.totalorder %s3727_s16, %s3723_s15 }
 0x161   :  { %p3730_p8 = por %p3729_p7, %p3728_p6 }
 0x163   :  { %p3731_p9 = pnand %p3730_p8, %p3724_p5 }
 0x165   :  { %3734 = shalt.err (!%p3731_p9)
}
 0x166   :  { %s4491_s0 = sld [smem:[#allocation59_spill]]  ;;  %s3972_s18 = smov [#allocation21]  }
 0x167   :  { %209 = dma.hbm_to_vmem [thread:$0]  %s4490_s9, 16, %s207_s3, [#allocation17]  }
 0x168   :  { %s226_s14 = sshll.u32 %s3972_s18, 4  ;;  %s3973_s12 = smov [#allocation24]   ;;  %s227_s14 = int_to_ptr.vmem [resolvable:$true] %s226_s14 }
 0x169   :  { %s249_s22 = sshll.u32 %s3973_s12, 4  ;;  %s250_s22 = int_to_ptr.vmem [resolvable:$true] %s249_s22 }
 0x16c   :  { %s3735_s23 = scalar_lea.hbm %s4491_s0, 32 }
 0x16d   :  { %p3736_p10 = scmp.ne.s32.totalorder %s4491_s0, %s3735_s23  ;;  %p3739_p11 = scmp.lt.u32.totalorder %s3735_s23, %s4491_s0 }
 0x16f   :  { %p3741_p12 = pnand %p3739_p11, %p3736_p10 }
 0x171   :  { %3744 = shalt.err (!%p3741_p12)
}
 0x172   :  { %s3745_s17 = scalar_lea.vmem %s227_s14, 32  ;;  %p3750_p0 = scmp.lt.s32.totalorder %s227_s14, %s227_s14 }
 0x173   :  { %p3746_p13 = scmp.ne.s32.totalorder %s227_s14, %s3745_s17  ;;  %p3751_p1 = scmp.lt.s32.totalorder %s3745_s17, %s3745_s17 }
 0x175   :  { %p3752_p2 = por %p3751_p1, %p3750_p0 }
 0x177   :  { %p3753_p3 = pnand %p3752_p2, %p3746_p13 }
 0x179   :  { %3756 = shalt.err (!%p3753_p3)
}
 0x17a   :  { %s4492_s5 = sld [smem:[#allocation61_spill]] }
 0x17b   :  { %229 = dma.hbm_to_vmem [thread:$0]  %s4491_s0, 32, %s227_s14, [#allocation20]  }
 0x180   :  { %s3757_s26 = scalar_lea.hbm %s4492_s5, 256 }
 0x181   :  { %p3758_p4 = scmp.ne.s32.totalorder %s4492_s5, %s3757_s26  ;;  %p3761_p5 = scmp.lt.u32.totalorder %s3757_s26, %s4492_s5 }
 0x183   :  { %p3763_p6 = pnand %p3761_p5, %p3758_p4 }
 0x185   :  { %3766 = shalt.err (!%p3763_p6)
}
 0x186   :  { %s3767_s28 = scalar_lea.vmem %s250_s22, 256  ;;  %p3772_p8 = scmp.lt.s32.totalorder %s250_s22, %s250_s22 }
 0x187   :  { %p3768_p7 = scmp.ne.s32.totalorder %s250_s22, %s3767_s28  ;;  %p3773_p9 = scmp.lt.s32.totalorder %s3767_s28, %s3767_s28 }
 0x189   :  { %p3774_p10 = por %p3773_p9, %p3772_p8 }
 0x18b   :  { %p3775_p11 = pnand %p3774_p10, %p3768_p7 }
 0x18d   :  { %3778 = shalt.err (!%p3775_p11)
}
 0x18e   :  { %s4493_s4 = sld [smem:[#allocation63_spill]]  ;;  %s3974_s1 = smov [#allocation27]  }
 0x18f   :  { %255 = dma.hbm_to_vmem [thread:$0]  %s4492_s5, 256, %s250_s22, [#allocation23], %s3960_s29, %s3960_s29, %s3961_s20  }
 0x190   :  { %s275_s25 = sshll.u32 %s3974_s1, 4  ;;  %s3975_s2 = smov [#allocation30]   ;;  %s276_s25 = int_to_ptr.vmem [resolvable:$true] %s275_s25 }
 0x191   :  { %s300_s24 = sshll.u32 %s3975_s2, 4  ;;  %s301_s24 = int_to_ptr.vmem [resolvable:$true] %s300_s24 }
 0x194   :  { %s3779_s7 = scalar_lea.hbm %s4493_s4, 1024 }
 0x195   :  { %p3780_p12 = scmp.ne.s32.totalorder %s4493_s4, %s3779_s7  ;;  %p3783_p13 = scmp.lt.u32.totalorder %s3779_s7, %s4493_s4 }
 0x197   :  { %p3785_p0 = pnand %p3783_p13, %p3780_p12 }
 0x199   :  { %3788 = shalt.err (!%p3785_p0)
}
 0x19a   :  { %s3789_s8 = scalar_lea.vmem %s276_s25, 1024  ;;  %p3794_p2 = scmp.lt.s32.totalorder %s276_s25, %s276_s25 }
 0x19b   :  { %p3790_p1 = scmp.ne.s32.totalorder %s276_s25, %s3789_s8  ;;  %p3795_p3 = scmp.lt.s32.totalorder %s3789_s8, %s3789_s8 }
 0x19d   :  { %p3796_p4 = por %p3795_p3, %p3794_p2 }
 0x19f   :  { %p3797_p5 = pnand %p3796_p4, %p3790_p1 }
 0x1a1   :  { %3800 = shalt.err (!%p3797_p5)
}
 0x1a2   :  { %s4494_s10 = sld [smem:[#allocation65_spill]] }
 0x1a3   :  { %281 = dma.hbm_to_vmem [thread:$0]  %s4493_s4, 1024, %s276_s25, [#allocation26], %s3960_s29, %s3960_s29, %s3961_s20  }
 0x1a8   :  { %s3801_s3 = scalar_lea.hbm %s4494_s10, 16 }
 0x1a9   :  { %p3802_p6 = scmp.ne.s32.totalorder %s4494_s10, %s3801_s3  ;;  %p3805_p7 = scmp.lt.u32.totalorder %s3801_s3, %s4494_s10 }
 0x1ab   :  { %p3807_p8 = pnand %p3805_p7, %p3802_p6 }
 0x1ad   :  { %3810 = shalt.err (!%p3807_p8)
}
 0x1ae   :  { %s3811_s21 = scalar_lea.vmem %s301_s24, 16  ;;  %s3815_s6 = scalar_lea.vmem %s301_s24, 32 }
 0x1af   :  { %p3812_p9 = scmp.ne.s32.totalorder %s301_s24, %s3811_s21  ;;  %p3816_p10 = scmp.lt.s32.totalorder %s301_s24, %s301_s24 }
 0x1b0   :  { %p3817_p11 = scmp.lt.s32.totalorder %s3815_s6, %s3811_s21 }
 0x1b2   :  { %p3818_p12 = por %p3817_p11, %p3816_p10 }
 0x1b4   :  { %p3819_p13 = pnand %p3818_p12, %p3812_p9 }
 0x1b6   :  { %3822 = shalt.err (!%p3819_p13)
}
 0x1b7   :  { %s4495_s9 = sld [smem:[#allocation66_spill]]  ;;  %s3976_s11 = smov [#allocation33]  }
 0x1b8   :  { %303 = dma.hbm_to_vmem [thread:$0]  %s4494_s10, 16, %s301_s24, [#allocation29]  }
 0x1b9   :  { %s321_s15 = sshll.u32 %s3976_s11, 4  ;;  %s3977_s16 = smov [#allocation36]   ;;  %s322_s15 = int_to_ptr.vmem [resolvable:$true] %s321_s15 }
 0x1ba   :  { %s348_s0 = sshll.u32 %s3977_s16, 4  ;;  %s349_s0 = int_to_ptr.vmem [resolvable:$true] %s348_s0 }
 0x1bd   :  { %s3823_s18 = scalar_lea.hbm %s4495_s9, 2048 }
 0x1be   :  { %p3824_p0 = scmp.ne.s32.totalorder %s4495_s9, %s3823_s18  ;;  %p3827_p1 = scmp.lt.u32.totalorder %s3823_s18, %s4495_s9 }
 0x1c0   :  { %p3829_p2 = pnand %p3827_p1, %p3824_p0 }
 0x1c2   :  { %3832 = shalt.err (!%p3829_p2)
}
 0x1c3   :  { %s3833_s14 = scalar_lea.vmem %s322_s15, 2048  ;;  %p3838_p4 = scmp.lt.s32.totalorder %s322_s15, %s322_s15 }
 0x1c4   :  { %p3834_p3 = scmp.ne.s32.totalorder %s322_s15, %s3833_s14  ;;  %p3839_p5 = scmp.lt.s32.totalorder %s3833_s14, %s3833_s14 }
 0x1c6   :  { %p3840_p6 = por %p3839_p5, %p3838_p4 }
 0x1c8   :  { %p3841_p7 = pnand %p3840_p6, %p3834_p3 }
 0x1ca   :  { %3844 = shalt.err (!%p3841_p7)
}
 0x1cb   :  { %327 = dma.hbm_to_vmem [thread:$0]  %s4495_s9, 2048, %s322_s15, [#allocation32], %s3960_s29, %s3960_s29, %s3961_s20  }
 0x1cc   :  { %s3845_s12 = scalar_lea.hbm %s4145_s13, 16 }
 0x1cd   :  { %p3846_p8 = scmp.ne.s32.totalorder %s4145_s13, %s3845_s12  ;;  %p3849_p9 = scmp.lt.u32.totalorder %s3845_s12, %s4145_s13 }
 0x1cf   :  { %p3851_p10 = pnand %p3849_p9, %p3846_p8 }
 0x1d1   :  { %3854 = shalt.err (!%p3851_p10)
}
 0x1d2   :  { %s3855_s22 = scalar_lea.vmem %s349_s0, 16  ;;  %s3859_s23 = scalar_lea.vmem %s349_s0, 32 }
 0x1d3   :  { %p3856_p11 = scmp.ne.s32.totalorder %s349_s0, %s3855_s22  ;;  %p3860_p12 = scmp.lt.s32.totalorder %s349_s0, %s349_s0 }
 0x1d4   :  { %p3861_p13 = scmp.lt.s32.totalorder %s3859_s23, %s3855_s22 }
 0x1d6   :  { %p3862_p0 = por %p3861_p13, %p3860_p12 }
 0x1d8   :  { %p3863_p1 = pnand %p3862_p0, %p3856_p11 }
 0x1da   :  { %3866 = shalt.err (!%p3863_p1)
}
 0x1db   :  { %351 = dma.hbm_to_vmem [thread:$0]  %s4145_s13, 16, %s349_s0, [#allocation35]  }
 0x1dc   :  { %s3978_s29 = smov [#allocation37]   ;;  %s3867_s5 = scalar_lea.hbm %s4150_s19, 16 }
 0x1dd   :  { %s358_s17 = sshll.u32 %s3978_s29, 4  ;;  %p3868_p2 = scmp.ne.s32.totalorder %s4150_s19, %s3867_s5  ;;  %s359_s17 = int_to_ptr.vmem [resolvable:$true] %s358_s17 }
 0x1de   :  { %p3871_p3 = scmp.lt.u32.totalorder %s3867_s5, %s4150_s19 }
 0x1e0   :  { %p3873_p4 = pnand %p3871_p3, %p3868_p2 }
 0x1e2   :  { %3876 = shalt.err (!%p3873_p4)
}
 0x1e3   :  { %s3877_s26 = scalar_lea.vmem %s359_s17, 16  ;;  %s3881_s28 = scalar_lea.vmem %s359_s17, 32 }
 0x1e4   :  { %p3878_p5 = scmp.ne.s32.totalorder %s359_s17, %s3877_s26  ;;  %p3882_p6 = scmp.lt.s32.totalorder %s359_s17, %s359_s17 }
 0x1e5   :  { %p3883_p7 = scmp.lt.s32.totalorder %s3881_s28, %s3877_s26 }
 0x1e7   :  { %p3884_p8 = por %p3883_p7, %p3882_p6 }
 0x1e9   :  { %p3885_p9 = pnand %p3884_p8, %p3878_p5 }
 0x1eb   :  { %3888 = shalt.err (!%p3885_p9)
}
 0x1ec   :  { %361 = dma.hbm_to_vmem [thread:$0]  %s4150_s19, 16, %s359_s17, [#allocation38]  }
 0x1ed   :  { %3889 = dma.done.wait [#allocation3], 16  }
 0x1ee   :  { %3890 = vsyncadd [#allocation3], 4294967280 }
 0x1ef   :  { %3891 = dma.done.wait [#allocation5], 4160  }
 0x1f0   :  { %3892 = vsyncadd [#allocation5], 4294963136 }
 0x1f1   :  { %3893 = dma.done.wait [#allocation8], 64  }
 0x1f2   :  { %3894 = vsyncadd [#allocation8], 4294967232 }
 0x1f3   :  { %3895 = dma.done.wait [#allocation11], 64  }
 0x1f4   :  { %3896 = vsyncadd [#allocation11], 4294967232 }
 0x1f5   :  { %3897 = dma.done.wait [#allocation14], 8224  }
 0x1f6   :  { %3898 = vsyncadd [#allocation14], 4294959072 }
 0x1f7   :  { %3899 = dma.done.wait [#allocation17], 48  }
 0x1f8   :  { %3900 = vsyncadd [#allocation17], 4294967248 }
 0x1f9   :  { %3901 = dma.done.wait [#allocation20], 48  }
 0x1fa   :  { %3902 = vsyncadd [#allocation20], 4294967248 }
 0x1fb   :  { %3903 = dma.done.wait [#allocation23], 512  }
 0x1fc   :  { %3904 = vsyncadd [#allocation23], 4294966784 }
 0x1fd   :  { %3905 = dma.done.wait [#allocation26], 2048  }
 0x1fe   :  { %3906 = vsyncadd [#allocation26], 4294965248 }
 0x1ff   :  { %3907 = dma.done.wait [#allocation29], 32  }
 0x200   :  { %3908 = vsyncadd [#allocation29], 4294967264 }
 0x201   :  { %3909 = dma.done.wait [#allocation32], 4096  }
 0x202   :  { %3910 = vsyncadd [#allocation32], 4294963200 }
 0x203   :  { %3911 = dma.done.wait [#allocation35], 32  }
 0x204   :  { %3912 = vsyncadd [#allocation35], 4294967264 }
 0x205   :  { %3913 = dma.done.wait [#allocation38], 16  }
 0x206   :  { %3914 = vsyncadd [#allocation38], 4294967280  ;;  %s4496_s13 = sld [smem:[#allocation53_spill]]  ;;  %vm438_vm0 = vcmask 523264   ;;  %v485_v14 = vld [vmem:[#allocation4 + $0x8] sm:$0xff]  ;;  %v487_v16 = vld [vmem:[#allocation4 + $0x18] sm:$0xff] }
 0x207   :  { %v489_v15 = vld [vmem:[#allocation4 + $0x28] sm:$0xff]  ;;  %v491_v18 = vld [vmem:[#allocation4 + $0x38] sm:$0xff]  ;;  %v484_v19 = vld [vmem:[#allocation4] sm:$0xff]  ;;  %v3979_v42 = vmov 0.0   ;;  %s4497_s19 = sld [smem:[#allocation55_spill]]  ;;  %s4498_s4 = sld [smem:[#allocation54_spill]] }
 0x208   :  { %v2926_v17 = vpack.c.bf16 %v489_v15, %v485_v14  ;;  %v488_v20 = vld [vmem:[#allocation4 + $0x20] sm:$0xff]  ;;  %v2942_v21 = vpack.c.bf16 %v491_v18, %v487_v16  ;;  %v486_v23 = vld [vmem:[#allocation4 + $0x10] sm:$0xff]  ;;  %v493_v26 = vld [vmem:[#allocation4 + $0x48] sm:$0xff]  ;;  %608 = vmatprep.mubr.f32.mxu0 %v3979_v42  ;;  %685 = vmatprep.mubr.f32.mxu1 %v3979_v42  ;;  %vm707_vm1 = vcmask 130048   ;;  %vm943_vm2 = vcmask 1041408   ;;  %s4499_s1 = sld [smem:[#allocation60_spill]] }
 0x209   :  { %v2928_v22 = vpack.c.bf16 %v488_v20, %v484_v19  ;;  %v490_v24 = vld [vmem:[#allocation4 + $0x30] sm:$0xff]  ;;  %v497_v27 = vld [vmem:[#allocation4 + $0x68] sm:$0xff]  ;;  %v495_v28 = vld [vmem:[#allocation4 + $0x58] sm:$0xff]  ;;  %vm3981_vm3 = vmmov 0   ;;  %vm1485_vm4 = vcmask 64512   ;;  %s4500_s25 = sld [smem:[#allocation62_spill]] }
 0x20a   :  { %2927 = vmatprep.subr.bf16.mxu0 %v2926_v17  ;;  %v2944_v25 = vpack.c.bf16 %v490_v24, %v486_v23  ;;  %2943 = vmatprep.subr.bf16.mxu1 %v2942_v21  ;;  %v2930_v29 = vpack.c.bf16 %v497_v27, %v493_v26  ;;  %v499_v30 = vld [vmem:[#allocation4 + $0x78] sm:$0xff]  ;;  %v492_v31 = vld [vmem:[#allocation4 + $0x40] sm:$0xff]  ;;  %v494_v35 = vld [vmem:[#allocation4 + $0x50] sm:$0xff]  ;;  %vm1665_vm6 = vcmask 15360   ;;  %s4502_s2 = sld [smem:[#allocation64_spill]]  ;;  %s4504_s24 = sld [smem:[#allocation68_spill]] }
 0x20b   :  { %2929 = vmatpush1.bf16.msra.mxu0 %v2928_v22  ;;  %v496_v32 = vld [vmem:[#allocation4 + $0x60] sm:$0xff]  ;;  %v2946_v33 = vpack.c.bf16 %v499_v30, %v495_v28  ;;  %v498_v36 = vld [vmem:[#allocation4 + $0x70] sm:$0xff]  ;;  %v501_v37 = vld [vmem:[#allocation4 + $0x88] sm:$0xff] }
 0x20c   :  { %v436_v0 = vld [vmem:[%s4496_s13] sm:$0xff]  ;;  %v437_v1 = vld [vmem:[%s4496_s13 + $0x8] sm:$0xff]  ;;  %2945 = vmatpush1.bf16.msra.mxu1 %v2944_v25  ;;  %v2932_v34 = vpack.c.bf16 %v496_v32, %v492_v31  ;;  %2931 = vmatprep.subr.bf16.mxu0 %v2930_v29  ;;  %v2948_v38 = vpack.c.bf16 %v498_v36, %v494_v35  ;;  %v502_v47 = vld [vmem:[#allocation4 + $0x90] sm:$0xff] }
 0x20d   :  { %v439_v2 = vsel %vm438_vm0, %v436_v0, 0.0  ;;  %v442_v3 = vsel %vm438_vm0, %v437_v1, 0.0  ;;  %v505_v39 = vld [vmem:[#allocation4 + $0xa8] sm:$0xff]  ;;  %v503_v40 = vld [vmem:[#allocation4 + $0x98] sm:$0xff]  ;;  %2947 = vmatprep.subr.bf16.mxu1 %v2946_v33  ;;  %v500_v45 = vld [vmem:[#allocation4 + $0x80] sm:$0xff] }
 0x20e   :  { %440 = vadd.xlane.f32.xlu0 %v439_v2  ;;  %v507_v41 = vld [vmem:[#allocation4 + $0xb8] sm:$0xff]  ;;  %v2934_v43 = vpack.c.bf16 %v505_v39, %v501_v37  ;;  %v504_v46 = vld [vmem:[#allocation4 + $0xa0] sm:$0xff]  ;;  %v506_v49 = vld [vmem:[#allocation4 + $0xb0] sm:$0xff] }
 0x20f   :  { %2933 = vmatpush1.bf16.msra.mxu0 %v2932_v34  ;;  %v2950_v44 = vpack.c.bf16 %v507_v41, %v503_v40  ;;  %v2936_v48 = vpack.c.bf16 %v504_v46, %v500_v45  ;;  %v509_v50 = vld [vmem:[#allocation4 + $0xc8] sm:$0xff]  ;;  %v2952_v52 = vpack.c.bf16 %v506_v49, %v502_v47  ;;  %v511_v54 = vld [vmem:[#allocation4 + $0xd8] sm:$0xff]  ;;  %v508_v56 = vld [vmem:[#allocation4 + $0xc0] sm:$0xff] }
 0x210   :  { %2949 = vmatpush1.bf16.msra.mxu1 %v2948_v38  ;;  %v513_v51 = vld [vmem:[#allocation4 + $0xe8] sm:$0xff]  ;;  %2935 = vmatprep.subr.bf16.mxu0 %v2934_v43  ;;  %v515_v55 = vld [vmem:[#allocation4 + $0xf8] sm:$0xff]  ;;  %v512_v58 = vld [vmem:[#allocation4 + $0xe0] sm:$0xff] }
 0x211   :  { %2951 = vmatprep.subr.bf16.mxu1 %v2950_v44  ;;  %v2938_v53 = vpack.c.bf16 %v513_v51, %v509_v50  ;;  %v2954_v57 = vpack.c.bf16 %v515_v55, %v511_v54  ;;  %v510_v59 = vld [vmem:[#allocation4 + $0xd0] sm:$0xff]  ;;  %v2940_v61 = vpack.c.bf16 %v512_v58, %v508_v56  ;;  %v783_v63 = vld [vmem:[%s4497_s19 + $0x8] sm:$0xff]  ;;  %v782_v14 = vld [vmem:[%s4497_s19] sm:$0xff] }
 0x212   :  { %443 = vadd.xlane.f32.xlu0 %v442_v3  ;;  %v514_v60 = vld [vmem:[#allocation4 + $0xf0] sm:$0xff]  ;;  %v787_v17 = vld [vmem:[%s4497_s19 + $0x28] sm:$0xff]  ;;  %v786_v24 = vld [vmem:[%s4497_s19 + $0x20] sm:$0xff] }
 0x213   :  { %2937 = vmatpush1.bf16.msra.mxu0 %v2936_v48  ;;  %v2956_v62 = vpack.c.bf16 %v514_v60, %v510_v59  ;;  %v784_v15 = vld [vmem:[%s4497_s19 + $0x10] sm:$0xff]  ;;  %v789_v18 = vld [vmem:[%s4497_s19 + $0x38] sm:$0xff]  ;;  %v791_v26 = vld [vmem:[%s4497_s19 + $0x48] sm:$0xff] }
 0x214   :  { %2953 = vmatpush1.bf16.msra.mxu1 %v2952_v52  ;;  %2939 = vmatprep.subr.bf16.mxu0 %v2938_v53  ;;  %v2964_v22 = vpack.c.bf16 %v784_v15, %v782_v14  ;;  %v2966_v23 = vpack.c.bf16 %v789_v18, %v787_v17  ;;  %v788_v25 = vld [vmem:[%s4497_s19 + $0x30] sm:$0xff]  ;;  %v793_v27 = vld [vmem:[%s4497_s19 + $0x58] sm:$0xff]  ;;  %v790_v30 = vld [vmem:[%s4497_s19 + $0x40] sm:$0xff] }
 0x215   :  { %2955 = vmatprep.subr.bf16.mxu1 %v2954_v57  ;;  %v2968_v28 = vpack.c.bf16 %v788_v25, %v786_v24  ;;  %v2970_v29 = vpack.c.bf16 %v793_v27, %v791_v26  ;;  %v792_v31 = vld [vmem:[%s4497_s19 + $0x50] sm:$0xff]  ;;  %v795_v32 = vld [vmem:[%s4497_s19 + $0x68] sm:$0xff]  ;;  %v797_v33 = vld [vmem:[%s4497_s19 + $0x78] sm:$0xff] }
 0x216   :  { %v2972_v34 = vpack.c.bf16 %v792_v31, %v790_v30  ;;  %v2974_v35 = vpack.c.bf16 %v797_v33, %v795_v32  ;;  %v794_v36 = vld [vmem:[%s4497_s19 + $0x60] sm:$0xff]  ;;  %v796_v37 = vld [vmem:[%s4497_s19 + $0x70] sm:$0xff]  ;;  %v799_v38 = vld [vmem:[%s4497_s19 + $0x88] sm:$0xff] }
 0x217   :  { %2941 = vmatpush1.bf16.msra.mxu0 %v2940_v61  ;;  %v801_v39 = vld [vmem:[%s4497_s19 + $0x98] sm:$0xff]  ;;  %v2976_v40 = vpack.c.bf16 %v796_v37, %v794_v36  ;;  %v798_v43 = vld [vmem:[%s4497_s19 + $0x80] sm:$0xff]  ;;  %v800_v44 = vld [vmem:[%s4497_s19 + $0x90] sm:$0xff] }
 0x218   :  { %2957 = vmatpush1.bf16.msra.mxu1 %v2956_v62  ;;  %v2978_v41 = vpack.c.bf16 %v801_v39, %v799_v38  ;;  %v803_v45 = vld [vmem:[%s4497_s19 + $0xa8] sm:$0xff]  ;;  %v805_v46 = vld [vmem:[%s4497_s19 + $0xb8] sm:$0xff]  ;;  %v2980_v47 = vpack.c.bf16 %v800_v44, %v798_v43  ;;  %v802_v49 = vld [vmem:[%s4497_s19 + $0xa0] sm:$0xff] }
 0x219   :  { %v2982_v48 = vpack.c.bf16 %v805_v46, %v803_v45  ;;  %v804_v50 = vld [vmem:[%s4497_s19 + $0xb0] sm:$0xff]  ;;  %v807_v51 = vld [vmem:[%s4497_s19 + $0xc8] sm:$0xff]  ;;  %v809_v52 = vld [vmem:[%s4497_s19 + $0xd8] sm:$0xff] }
 0x21a   :  { %v2984_v53 = vpack.c.bf16 %v804_v50, %v802_v49  ;;  %v2986_v54 = vpack.c.bf16 %v809_v52, %v807_v51  ;;  %v806_v55 = vld [vmem:[%s4497_s19 + $0xc0] sm:$0xff]  ;;  %v808_v56 = vld [vmem:[%s4497_s19 + $0xd0] sm:$0xff]  ;;  %v811_v57 = vld [vmem:[%s4497_s19 + $0xe8] sm:$0xff]  ;;  %v518_v49 = vlaneseq }
 0x21b   :  { %v813_v58 = vld [vmem:[%s4497_s19 + $0xf8] sm:$0xff]  ;;  %v2988_v59 = vpack.c.bf16 %v808_v56, %v806_v55  ;;  %v810_v61 = vld [vmem:[%s4497_s19 + $0xe0] sm:$0xff]  ;;  %v812_v62 = vld [vmem:[%s4497_s19 + $0xf0] sm:$0xff] }
 0x21c   :  { %v2990_v60 = vpack.c.bf16 %v813_v58, %v811_v57  ;;  %v825_v14 = vld [vmem:[%s4497_s19 + $0x158] sm:$0xff]  ;;  %v822_v17 = vld [vmem:[%s4497_s19 + $0x140] sm:$0xff]  ;;  %v824_v18 = vld [vmem:[%s4497_s19 + $0x150] sm:$0xff]  ;;  %v519_v50 = vshrl.u32 %v518_v49, 7 }
 0x21d   :  { %v828_v24 = vld [vmem:[%s4497_s19 + $0x170] sm:$0xff]  ;;  %v831_v25 = vld [vmem:[%s4497_s19 + $0x188] sm:$0xff]  ;;  %v837_v31 = vld [vmem:[%s4497_s19 + $0x1b8] sm:$0xff] }
 0x21e   :  { %v835_v30 = vld [vmem:[%s4497_s19 + $0x1a8] sm:$0xff]  ;;  %v834_v33 = vld [vmem:[%s4497_s19 + $0x1a0] sm:$0xff]  ;;  %v841_v37 = vld [vmem:[%s4497_s19 + $0x1d8] sm:$0xff]  ;;  %v4366_v51 = vsub.s32 0, %v519_v50  ;;  %v528_v52 = vsub.s32 2, %v519_v50  ;;  %v532_v55 = vsub.s32 3, %v519_v50 }
 0x21f   :  { %v3014_v32 = vpack.c.bf16 %v837_v31, %v835_v30  ;;  %v839_v36 = vld [vmem:[%s4497_s19 + $0x1c8] sm:$0xff]  ;;  %v838_v39 = vld [vmem:[%s4497_s19 + $0x1c0] sm:$0xff]  ;;  %v845_v44 = vld [vmem:[%s4497_s19 + $0x1f8] sm:$0xff] }
 0x220   :  { %v3018_v38 = vpack.c.bf16 %v841_v37, %v839_v36  ;;  %v843_v43 = vld [vmem:[%s4497_s19 + $0x1e8] sm:$0xff]  ;;  %v842_v46 = vld [vmem:[%s4497_s19 + $0x1e0] sm:$0xff] }
 0x221   :  { %v3022_v45 = vpack.c.bf16 %v845_v44, %v843_v43  ;;  %v846_v36 = vld [vmem:[#allocation9] sm:$0x3] }
 0x222   :  { %v1174_v49 = vld [vmem:[#allocation13 + $0x18] sm:$0xff] }
 0x29b   :  { %v441_v4 = vpop.xlane.xlu0 %440 }
 0x29c   :  { %v446_v5 = vmul.f32 0.015625, %v441_v4 }
 0x29e   :  { %v4280_v6 = vsub.f32 %v436_v0, %v446_v5  ;;  %v785_v0 = vld [vmem:[%s4497_s19 + $0x18] sm:$0xff] }
 0x29f   :  { %v444_v7 = vpop.xlane.xlu0 %443 }
 0x2a0   :  { %v447_v8 = vmul.f32 0.015625, %v444_v7  ;;  %v450_v9 = vmul.f32 %v4280_v6, %v4280_v6 }
 0x2a2   :  { %v4284_v10 = vsub.f32 %v437_v1, %v447_v8  ;;  %v452_v11 = vsel %vm438_vm0, %v450_v9, 0.0  ;;  %v2962_v1 = vpack.c.bf16 %v785_v0, %v783_v63  ;;  %v815_v63 = vld [vmem:[%s4497_s19 + $0x108] sm:$0xff]  ;;  %v817_v0 = vld [vmem:[%s4497_s19 + $0x118] sm:$0xff] }
 0x2a3   :  { %453 = vadd.xlane.f32.xlu1 %v452_v11  ;;  %v2554_v11 = vld [vmem:[%s4498_s4] ss:$0 sm:$0xff] }
 0x2a4   :  { %v451_v12 = vmul.f32 %v4284_v10, %v4284_v10  ;;  %2963 = vmatprep.subr.bf16.mxu1 %v2962_v1  ;;  %v2992_v1 = vpack.c.bf16 %v812_v62, %v810_v61 }
 0x2a6   :  { %v455_v13 = vsel %vm438_vm0, %v451_v12, 0.0 }
 0x2a7   :  { %456 = vadd.xlane.f32.xlu1 %v455_v13  ;;  %v2555_v13 = vld [vmem:[#allocation2] ss:$0 sm:$0xff] }
 0x330   :  { %v454_v2 = vpop.xlane.xlu1 %453 }
 0x331   :  { %v458_v3 = vmul.f32 0.015625, %v454_v2  ;;  %v2994_v2 = vpack.c.bf16 %v817_v0, %v815_v63 }
 0x333   :  { %v460_v4 = vadd.f32 1e-05, %v458_v3  ;;  %v814_v3 = vld [vmem:[%s4497_s19 + $0x100] sm:$0xff] }
 0x334   :  { %v457_v5 = vpop.xlane.xlu1 %456 }
 0x335   :  { %3349 = vrsqrt.f32 %v460_v4  ;;  %v459_v7 = vmul.f32 0.015625, %v457_v5  ;;  %v816_v4 = vld [vmem:[%s4497_s19 + $0x110] sm:$0xff]  ;;  %v819_v5 = vld [vmem:[%s4497_s19 + $0x128] sm:$0xff] }
 0x337   :  { %v461_v8 = vadd.f32 1e-05, %v459_v7  ;;  %v821_v7 = vld [vmem:[%s4497_s19 + $0x138] sm:$0xff] }
 0x339   :  { %3351 = vrsqrt.f32 %v461_v8  ;;  %v2996_v8 = vpack.c.bf16 %v816_v4, %v814_v3 }
 0x33f   :  { %v3350_v9 = vpop.eup %3349 }
 0x340   :  { %v464_v12 = vmul.f32 %v3350_v9, %v4280_v6  ;;  %v2998_v9 = vpack.c.bf16 %v821_v7, %v819_v5 }
 0x342   :  { %v473_v16 = vmul.f32 %v2554_v11, %v464_v12  ;;  %v820_v12 = vld [vmem:[%s4497_s19 + $0x130] sm:$0xff] }
 0x343   :  { %v3352_v19 = vpop.eup %3351 }
 0x344   :  { %v482_v20 = vadd.f32 %v2555_v13, %v473_v16  ;;  %v465_v21 = vmul.f32 %v3352_v19, %v4284_v10  ;;  %v827_v19 = vld [vmem:[%s4497_s19 + $0x168] sm:$0xff] }
 0x346   :  { %2556 = vmatmul.mubr.msk.f32.vlgmr.msra.gmra.mrb[0].mxu0 %vm438_vm0, %v482_v20  ;;  %2558 = vmatmul.mubr.msk.f32.vlgmr.msra.gmra.mrb[0].mxu1 %vm438_vm0, %v482_v20  ;;  %v474_v6 = vmul.f32 %v2554_v11, %v465_v21  ;;  %v818_v11 = vld [vmem:[%s4497_s19 + $0x120] sm:$0xff]  ;;  %v829_v20 = vld [vmem:[%s4497_s19 + $0x178] sm:$0xff]  ;;  %v3004_v21 = vpack.c.bf16 %v824_v18, %v822_v17 }
 0x347   :  { %614 = vmatprep.mubr.f32.mxu0 %v3979_v42  ;;  %691 = vmatprep.mubr.f32.mxu1 %v3979_v42  ;;  %v3000_v15 = vpack.c.bf16 %v820_v12, %v818_v11 }
 0x348   :  { %v483_v10 = vadd.f32 %v2555_v13, %v474_v6  ;;  %2965 = vmatpush1.bf16.msra.mxu1 %v2964_v22  ;;  %v823_v13 = vld [vmem:[%s4497_s19 + $0x148] sm:$0xff]  ;;  %v3006_v22 = vpack.c.bf16 %v829_v20, %v827_v19  ;;  %v833_v6 = vld [vmem:[%s4497_s19 + $0x198] sm:$0xff] }
 0x349   :  { %2967 = vmatprep.subr.bf16.mxu1 %v2966_v23  ;;  %v3002_v16 = vpack.c.bf16 %v825_v14, %v823_v13  ;;  %v826_v23 = vld [vmem:[%s4497_s19 + $0x160] sm:$0xff]  ;;  %v3010_v27 = vpack.c.bf16 %v833_v6, %v831_v25 }
 0x34a   :  { %2557 = vmatmul.mubr.msk.f32.gmra.mrb[2].mxu0 %vm438_vm0, %v483_v10  ;;  %2559 = vmatmul.mubr.msk.f32.gmra.mrb[2].mxu1 %vm438_vm0, %v483_v10  ;;  %v3008_v26 = vpack.c.bf16 %v828_v24, %v826_v23  ;;  %v830_v10 = vld [vmem:[%s4497_s19 + $0x180] sm:$0xff] }
 0x34b   :  { %775 = vmatprep.mubr.f32.mxu0 %v3979_v42  ;;  %v706_v6 = vld [vmem:[#allocation7] sm:$0x3] }
 0x34c   :  { %2969 = vmatpush1.bf16.msra.mxu1 %v2968_v28  ;;  %v832_v28 = vld [vmem:[%s4497_s19 + $0x190] sm:$0xff] }
 0x34d   :  { %2971 = vmatprep.subr.bf16.mxu1 %v2970_v29  ;;  %v3012_v29 = vpack.c.bf16 %v832_v28, %v830_v10 }
 0x350   :  { %2973 = vmatpush1.bf16.msra.mxu1 %v2972_v34  ;;  %v836_v34 = vld [vmem:[%s4497_s19 + $0x1b0] sm:$0xff] }
 0x351   :  { %2975 = vmatprep.subr.bf16.mxu1 %v2974_v35  ;;  %v3016_v35 = vpack.c.bf16 %v836_v34, %v834_v33 }
 0x354   :  { %2977 = vmatpush1.bf16.msra.mxu1 %v2976_v40  ;;  %v840_v40 = vld [vmem:[%s4497_s19 + $0x1d0] sm:$0xff] }
 0x355   :  { %2979 = vmatprep.subr.bf16.mxu1 %v2978_v41  ;;  %v3020_v41 = vpack.c.bf16 %v840_v40, %v838_v39  ;;  %v1021_v39 = vld [vmem:[%s4499_s1] sm:$0xff]  ;;  %v1022_v40 = vld [vmem:[%s4499_s1 + $0x8] sm:$0xff] }
 0x358   :  { %2981 = vmatpush1.bf16.msra.mxu1 %v2980_v47  ;;  %v844_v47 = vld [vmem:[%s4497_s19 + $0x1f0] sm:$0xff] }
 0x359   :  { %2983 = vmatprep.subr.bf16.mxu1 %v2982_v48  ;;  %v3024_v48 = vpack.c.bf16 %v844_v47, %v842_v46  ;;  %v4388_v47 = vld [vmem:[#allocation21] sm:$0x3] }
 0x35c   :  { %2985 = vmatpush1.bf16.msra.mxu1 %v2984_v53  ;;  %v516_v53 = vld [vmem:[#allocation6] sm:$0xf] }
 0x35d   :  { %2987 = vmatprep.subr.bf16.mxu1 %v2986_v54  ;;  %v4368_v54 = vsub.s32 1, %v519_v50  ;;  %v521_v56 = vrot.slane %v516_v53, %v4366_v51  ;;  %v529_v57 = vrot.slane %v516_v53, %v528_v52  ;;  %v533_v61 = vrot.slane %v516_v53, %v532_v55 }
 0x35f   :  { %v855_v37 = vrot.slane %v846_v36, %v4368_v54 }
 0x360   :  { %2989 = vmatpush1.bf16.msra.mxu1 %v2988_v59 }
 0x361   :  { %2991 = vmatprep.subr.bf16.mxu1 %v2990_v60  ;;  %v525_v60 = vrot.slane %v516_v53, %v4368_v54 }
 0x364   :  { %2993 = vmatpush1.bf16.msra.mxu1 %v2992_v1 }
 0x365   :  { %2995 = vmatprep.subr.bf16.mxu1 %v2994_v2 }
 0x368   :  { %2997 = vmatpush1.bf16.msra.mxu1 %v2996_v8 }
 0x369   :  { %2999 = vmatprep.subr.bf16.mxu1 %v2998_v9 }
 0x36c   :  { %3001 = vmatpush1.bf16.msra.mxu1 %v3000_v15 }
 0x36d   :  { %3003 = vmatprep.subr.bf16.mxu1 %v3002_v16 }
 0x370   :  { %3005 = vmatpush1.bf16.msra.mxu1 %v3004_v21 }
 0x371   :  { %3007 = vmatprep.subr.bf16.mxu1 %v3006_v22 }
 0x374   :  { %3009 = vmatpush1.bf16.msra.mxu1 %v3008_v26  ;;  %v929_v26 = vld [vmem:[#allocation10] sm:$0x3] }
 0x375   :  { %3011 = vmatprep.subr.bf16.mxu1 %v3010_v27  ;;  %v934_v27 = vrot.slane %v929_v26, %v4366_v51  ;;  %v938_v10 = vrot.slane %v929_v26, %v4368_v54  ;;  %v1196_v26 = vld [vmem:[#allocation13 + $0xc8] sm:$0xff] }
 0x378   :  { %3013 = vmatpush1.bf16.msra.mxu1 %v3012_v29 }
 0x379   :  { %3015 = vmatprep.subr.bf16.mxu1 %v3014_v32 }
 0x37c   :  { %3017 = vmatpush1.bf16.msra.mxu1 %v3016_v35  ;;  %v3980_v35 = vmov 0.0|0.0  }
 0x37d   :  { %3019 = vmatprep.subr.bf16.mxu1 %v3018_v38  ;;  %v851_v38 = vrot.slane %v846_v36, %v4366_v51  ;;  %v1199_v36 = vld [vmem:[#allocation13 + $0xe0] sm:$0xff] }
 0x380   :  { %3021 = vmatpush1.bf16.msra.mxu1 %v3020_v41 }
 0x381   :  { %3023 = vmatprep.subr.bf16.mxu1 %v3022_v45  ;;  %v4383_v45 = vpack.c.bf16 %v1022_v40, %v1021_v39  ;;  %v1206_v39 = vld [vmem:[#allocation13 + $0x118] sm:$0xff] }
 0x384   :  { %3025 = vmatpush1.bf16.msra.mxu1 %v3024_v48  ;;  %v1172_v48 = vld [vmem:[#allocation13 + $0x8] sm:$0xff] }
 0x385   :  { %v3037_v55 = vpack.c.bf16 %v1174_v49, %v1172_v48  ;;  %v1210_v48 = vld [vmem:[#allocation13 + $0x138] sm:$0xff] }
 0x419   :  { %v610_v58 = vpop.f32.mrb[0].mxu0  ;;  %v687_v59 = vpop.f32.mrb[0].mxu1 }
 0x41a   :  { %v612_v62 = vpop.f32.mrb[1].mxu0  ;;  %v689_v63 = vpop.f32.mrb[1].mxu1  ;;  %v611_v0 = vadd.f32 %v610_v58, %v521_v56  ;;  %v688_v1 = vadd.f32 %v687_v59, %v529_v57  ;;  %v1176_v58 = vld [vmem:[#allocation13 + $0x28] sm:$0xff]  ;;  %v1178_v59 = vld [vmem:[#allocation13 + $0x38] sm:$0xff] }
 0x41b   :  { %v613_v2 = vadd.f32 %v612_v62, %v525_v60  ;;  %v690_v3 = vadd.f32 %v689_v63, %v533_v61  ;;  %v3041_v62 = vpack.c.bf16 %v1178_v59, %v1176_v58  ;;  %v1175_v63 = vld [vmem:[#allocation13 + $0x20] sm:$0xff] }
 0x41c   :  { %v698_v14 = vmax.f32 %v611_v0, 0.0  ;;  %v700_v15 = vmax.f32 %v688_v1, 0.0  ;;  %v1177_v0 = vld [vmem:[#allocation13 + $0x30] sm:$0xff]  ;;  %v1180_v1 = vld [vmem:[#allocation13 + $0x48] sm:$0xff]  ;;  %v1211_v59 = vld [vmem:[#allocation13 + $0x140] sm:$0xff] }
 0x41d   :  { %v616_v4 = vpop.f32.mrb[2].mxu0  ;;  %v693_v5 = vpop.f32.mrb[2].mxu1  ;;  %v699_v18 = vmax.f32 %v613_v2, 0.0  ;;  %v701_v19 = vmax.f32 %v690_v3, 0.0  ;;  %v1182_v2 = vld [vmem:[#allocation13 + $0x58] sm:$0xff]  ;;  %v3043_v3 = vpack.c.bf16 %v1177_v0, %v1175_v63 }
 0x41e   :  { %v617_v7 = vadd.f32 %v616_v4, %v521_v56  ;;  %v694_v8 = vadd.f32 %v693_v5, %v529_v57  ;;  %v618_v9 = vpop.f32.mrb[3].mxu0  ;;  %v695_v11 = vpop.f32.mrb[3].mxu1  ;;  %v1171_v56 = vld [vmem:[#allocation13] sm:$0xff]  ;;  %v1173_v57 = vld [vmem:[#allocation13 + $0x10] sm:$0xff]  ;;  %v3045_v4 = vpack.c.bf16 %v1182_v2, %v1180_v1 }
 0x41f   :  { %v619_v12 = vadd.f32 %v618_v9, %v525_v60  ;;  %v696_v13 = vadd.f32 %v695_v11, %v533_v61  ;;  %v1096_v60 = vld [vmem:[#allocation12] sm:$0x3]  ;;  %v3039_v61 = vpack.c.bf16 %v1173_v57, %v1171_v56  ;;  %v1179_v5 = vld [vmem:[#allocation13 + $0x40] sm:$0xff]  ;;  %v1217_v2 = vld [vmem:[#allocation13 + $0x170] sm:$0xff] }
 0x420   :  { %v702_v16 = vmax.f32 %v617_v7, 0.0  ;;  %v704_v17 = vmax.f32 %v694_v8, 0.0  ;;  %v1181_v7 = vld [vmem:[#allocation13 + $0x50] sm:$0xff]  ;;  %v1184_v8 = vld [vmem:[#allocation13 + $0x68] sm:$0xff]  ;;  %v1186_v9 = vld [vmem:[#allocation13 + $0x78] sm:$0xff] }
 0x421   :  { %v703_v20 = vmax.f32 %v619_v12, 0.0  ;;  %v705_v21 = vmax.f32 %v696_v13, 0.0  ;;  %v3047_v11 = vpack.c.bf16 %v1181_v7, %v1179_v5  ;;  %v3049_v12 = vpack.c.bf16 %v1186_v9, %v1184_v8  ;;  %v1183_v13 = vld [vmem:[#allocation13 + $0x60] sm:$0xff]  ;;  %v1214_v56 = vld [vmem:[#allocation13 + $0x158] sm:$0xff]  ;;  %v1221_v9 = vld [vmem:[#allocation13 + $0x190] sm:$0xff] }
 0x422   :  { %v2960_v22 = vpack.c.bf16 %v702_v16, %v698_v14  ;;  %v3035_v23 = vpack.c.bf16 %v704_v17, %v700_v15  ;;  %v1185_v14 = vld [vmem:[#allocation13 + $0x70] sm:$0xff]  ;;  %v1188_v15 = vld [vmem:[#allocation13 + $0x88] sm:$0xff]  ;;  %v1190_v16 = vld [vmem:[#allocation13 + $0x98] sm:$0xff] }
 0x423   :  { %v2958_v24 = vpack.c.bf16 %v703_v20, %v699_v18  ;;  %v3033_v25 = vpack.c.bf16 %v705_v21, %v701_v19  ;;  %v3051_v17 = vpack.c.bf16 %v1185_v14, %v1183_v13  ;;  %v3053_v18 = vpack.c.bf16 %v1190_v16, %v1188_v15  ;;  %v1187_v19 = vld [vmem:[#allocation13 + $0x80] sm:$0xff]  ;;  %v1189_v20 = vld [vmem:[#allocation13 + $0x90] sm:$0xff]  ;;  %v1192_v21 = vld [vmem:[#allocation13 + $0xa8] sm:$0xff] }
 0x424   :  { %v1215_v1 = vld [vmem:[#allocation13 + $0x160] sm:$0xff]  ;;  %v1225_v16 = vld [vmem:[#allocation13 + $0x1b0] sm:$0xff] }
 0x425   :  { %2959 = vmatprep.subr.bf16.mxu0 %v2958_v24  ;;  %3102 = vmatprep.subr.bf16.mxu1 %v3033_v25  ;;  %v3083_v5 = vpack.c.bf16 %v1217_v2, %v1215_v1  ;;  %v1219_v8 = vld [vmem:[#allocation13 + $0x180] sm:$0xff] }
 0x426   :  { %2961 = vmatpush1.bf16.msra.mxu0 %v2960_v22  ;;  %v3087_v13 = vpack.c.bf16 %v1221_v9, %v1219_v8  ;;  %v1223_v15 = vld [vmem:[#allocation13 + $0x1a0] sm:$0xff] }
 0x427   :  { %3027 = vmatprep.subr.bf16.mxu0 %v2958_v24  ;;  %v1589_v8 = vld [vmem:[#allocation24 + $0x8] sm:$0xff] }
 0x429   :  { %2560 = vmatmul.mubr.msk.f32.vlgmr.msra.gmra.mrb[4].mxu0 %vm707_vm1, %v706_v6  ;;  %v1193_v6 = vld [vmem:[#allocation13 + $0xb0] sm:$0xff] }
 0x42f   :  { %3029 = vmatpush1.bf16.xpose.msra.mxu0 %v2960_v22  ;;  %v1194_v22 = vld [vmem:[#allocation13 + $0xb8] sm:$0xff] }
 0x430   :  { %3030 = vmatprep.subr.bf16.mxu0 %v3980_v35  ;;  %v3057_v24 = vpack.c.bf16 %v1194_v22, %v1192_v21  ;;  %v1227_v21 = vld [vmem:[#allocation13 + $0x1c0] sm:$0xff]  ;;  %v1229_v22 = vld [vmem:[#allocation13 + $0x1d0] sm:$0xff] }
 0x4fc   :  { %v777_v28 = vpop.f32.mrb[4].mxu0 }
 0x4fd   :  { %v941_v29 = vmul.f32 %v934_v27, %v777_v28  ;;  %v779_v30 = vpop.f32.mrb[5].mxu0  ;;  %v1198_v27 = vld [vmem:[#allocation13 + $0xd8] sm:$0xff] }
 0x4fe   :  { %v942_v31 = vmul.f32 %v938_v10, %v779_v30  ;;  %922 = vmatprep.mubr.f32.mxu1 %v779_v30  ;;  %v1197_v30 = vld [vmem:[#allocation13 + $0xd0] sm:$0xff] }
 0x4ff   :  { %923 = vmatmul.mubr.f32.vlgmr.msra.gmra.mrb[4].mxu1 %v777_v28  ;;  %v944_v32 = vsel %vm943_vm2, %v941_v29, 0.0  ;;  %v3061_v28 = vpack.c.bf16 %v1198_v27, %v1196_v26  ;;  %v1195_v29 = vld [vmem:[#allocation13 + $0xc0] sm:$0xff]  ;;  %v1233_v27 = vld [vmem:[#allocation13 + $0x1f0] sm:$0xff] }
 0x500   :  { %3104 = vmatpush1.bf16.xpose.msra.mxu1 %v3035_v23  ;;  %v945_v33 = vsel %vm943_vm2, %v942_v31, 0.0  ;;  %v1200_v31 = vld [vmem:[#allocation13 + $0xe8] sm:$0xff]  ;;  %v1231_v26 = vld [vmem:[#allocation13 + $0x1e0] sm:$0xff] }
 0x501   :  { %v946_v34 = vadd.f32 %v945_v33, %v944_v32  ;;  %3108 = vmatprep.subr.bf16.mxu1 %v3980_v35  ;;  %v1202_v32 = vld [vmem:[#allocation13 + $0xf8] sm:$0xff]  ;;  %v3063_v33 = vpack.c.bf16 %v1197_v30, %v1195_v29 }
 0x503   :  { %947 = vadd.xlane.f32.xlu1 %v946_v34  ;;  %v3065_v34 = vpack.c.bf16 %v1202_v32, %v1200_v31 }
 0x5d2   :  { %v924_v41 = vpop.f32.mrb[4].mxu1 }
 0x5d3   :  { %v926_v43 = vpop.f32.mrb[5].mxu1  ;;  %v925_v46 = vadd.f32 %v924_v41, %v851_v38  ;;  %v1204_v38 = vld [vmem:[#allocation13 + $0x108] sm:$0xff] }
 0x5d4   :  { %v927_v44 = vadd.f32 %v926_v43, %v855_v37  ;;  %v1201_v37 = vld [vmem:[#allocation13 + $0xf0] sm:$0xff]  ;;  %v3069_v41 = vpack.c.bf16 %v1206_v39, %v1204_v38  ;;  %v1203_v43 = vld [vmem:[#allocation13 + $0x100] sm:$0xff] }
 0x5d5   :  { %v3067_v40 = vpack.c.bf16 %v1201_v37, %v1199_v36 }
 0x5d6   :  { %1013 = vmatprep.mubr.f32.mxu0 %v927_v44  ;;  %v1205_v44 = vld [vmem:[#allocation13 + $0x110] sm:$0xff] }
 0x5d7   :  { %1014 = vmatmul.mubr.f32.vlgmr.msra.gmra.mrb[6].mxu0 %v925_v46  ;;  %v1208_v46 = vld [vmem:[#allocation13 + $0x128] sm:$0xff]  ;;  %v3071_v49 = vpack.c.bf16 %v1205_v44, %v1203_v43 }
 0x5d8   :  { %3032 = vmatpush3.bf16.msra.mxu0 %v4383_v45  ;;  %2705 = vmatprep.mubr.msk.f32.mxu0 %vm3981_vm3, %v3979_v42 }
 0x5d9   :  { %3034 = vmatprep.subr.bf16.mxu0 %v3033_v25  ;;  %v1191_v25 = vld [vmem:[#allocation13 + $0xa0] sm:$0xff] }
 0x5da   :  { %v3059_v10 = vpack.c.bf16 %v1193_v6, %v1191_v25  ;;  %v1234_v25 = vld [vmem:[#allocation13 + $0x1f8] sm:$0xff] }
 0x6aa   :  { %v1015_v50 = vpop.f32.mrb[6].mxu0 }
 0x6ab   :  { %v1020_v52 = vmul.f32 %v4388_v47, %v1015_v50  ;;  %v1017_v53 = vpop.f32.mrb[7].mxu0  ;;  %v3073_v50 = vpack.c.bf16 %v1210_v48, %v1208_v46 }
 0x6ac   :  { %v1209_v53 = vld [vmem:[#allocation13 + $0x130] sm:$0xff] }
 0x6ad   :  { %2706 = vmatmul.mubr.msk.f32.vlgmr.msra.gmra.mrb[8].mxu0 %vm707_vm1, %v1020_v52  ;;  %v1207_v52 = vld [vmem:[#allocation13 + $0x120] sm:$0xff] }
 0x6ae   :  { %3036 = vmatpush1.bf16.msra.mxu0 %v3035_v23  ;;  %1164 = vmatprep.mubr.f32.mxu0 %v3979_v42  ;;  %v3055_v23 = vpack.c.bf16 %v1189_v20, %v1187_v19  ;;  %v3075_v57 = vpack.c.bf16 %v1209_v53, %v1207_v52  ;;  %v3091_v19 = vpack.c.bf16 %v1225_v16, %v1223_v15  ;;  %v1663_v15 = vld [vmem:[%s4500_s25] sm:$0xff]  ;;  %v1752_v16 = vld [vmem:[#allocation25 + $0x10] sm:$0xff] }
 0x6af   :  { %3038 = vmatprep.subr.bf16.mxu0 %v3037_v55  ;;  %v1212_v55 = vld [vmem:[#allocation13 + $0x148] sm:$0xff] }
 0x6b0   :  { %v3077_v58 = vpack.c.bf16 %v1214_v56, %v1212_v55 }
 0x6b1   :  { %2562 = vmatmul.mubr.msk.f32.vlgmr.msra.gmra.mrb[10].mxu0 %vm707_vm1, %v1096_v60  ;;  %v1213_v60 = vld [vmem:[#allocation13 + $0x150] sm:$0xff] }
 0x6b2   :  { %3040 = vmatpush1.bf16.msra.mxu0 %v3039_v61  ;;  %v1216_v61 = vld [vmem:[#allocation13 + $0x168] sm:$0xff]  ;;  %v3079_v63 = vpack.c.bf16 %v1213_v60, %v1211_v59  ;;  %v948_v60 = vpop.xlane.xlu1 %947 }
 0x6b3   :  { %3042 = vmatprep.subr.bf16.mxu0 %v3041_v62  ;;  %v1218_v62 = vld [vmem:[#allocation13 + $0x178] sm:$0xff] }
 0x6b4   :  { %v3081_v0 = vpack.c.bf16 %v1218_v62, %v1216_v61  ;;  %v2564_v62 = vld [vmem:[#allocation18] ss:$0 sm:$0xff] }
 0x6b6   :  { %3044 = vmatpush1.bf16.msra.mxu0 %v3043_v3  ;;  %v1220_v3 = vld [vmem:[#allocation13 + $0x188] sm:$0xff] }
 0x6b7   :  { %3046 = vmatprep.subr.bf16.mxu0 %v3045_v4  ;;  %v1222_v4 = vld [vmem:[#allocation13 + $0x198] sm:$0xff] }
 0x6b8   :  { %v3085_v7 = vpack.c.bf16 %v1222_v4, %v1220_v3 }
 0x6ba   :  { %3048 = vmatpush1.bf16.msra.mxu0 %v3047_v11  ;;  %v1224_v11 = vld [vmem:[#allocation13 + $0x1a8] sm:$0xff] }
 0x6bb   :  { %3050 = vmatprep.subr.bf16.mxu0 %v3049_v12  ;;  %v1226_v12 = vld [vmem:[#allocation13 + $0x1b8] sm:$0xff] }
 0x6bc   :  { %v3089_v14 = vpack.c.bf16 %v1226_v12, %v1224_v11  ;;  %v1750_v12 = vld [vmem:[#allocation25] sm:$0xff] }
 0x6be   :  { %3052 = vmatpush1.bf16.msra.mxu0 %v3051_v17  ;;  %v1228_v17 = vld [vmem:[#allocation13 + $0x1c8] sm:$0xff] }
 0x6bf   :  { %3054 = vmatprep.subr.bf16.mxu0 %v3053_v18  ;;  %v1230_v18 = vld [vmem:[#allocation13 + $0x1d8] sm:$0xff] }
 0x6c0   :  { %v3093_v20 = vpack.c.bf16 %v1230_v18, %v1228_v17  ;;  %v1753_v17 = vld [vmem:[#allocation25 + $0x18] sm:$0xff] }
 0x6c1   :  { %v3118_v18 = vpack.c.bf16 %v1753_v17, %v1752_v16  ;;  %v2137_v16 = vld [vmem:[#allocation33 + $0x18] sm:$0xff] }
 0x6c2   :  { %3056 = vmatpush1.bf16.msra.mxu0 %v3055_v23  ;;  %v3095_v23 = vpack.c.bf16 %v1229_v22, %v1227_v21  ;;  %v1756_v21 = vld [vmem:[#allocation25 + $0x30] sm:$0xff]  ;;  %v1757_v22 = vld [vmem:[#allocation25 + $0x38] sm:$0xff] }
 0x6c3   :  { %3058 = vmatprep.subr.bf16.mxu0 %v3057_v24  ;;  %v1232_v24 = vld [vmem:[#allocation13 + $0x1e8] sm:$0xff] }
 0x6c4   :  { %v3097_v6 = vpack.c.bf16 %v1234_v25, %v1232_v24 }
 0x6c6   :  { %3060 = vmatpush1.bf16.msra.mxu0 %v3059_v10  ;;  %v3099_v10 = vpack.c.bf16 %v1233_v27, %v1231_v26  ;;  %v1927_v26 = vld [vmem:[%s4502_s2 + $0x8] sm:$0xff]  ;;  %v1928_v27 = vld [vmem:[%s4502_s2 + $0x10] sm:$0xff] }
 0x6c7   :  { %3062 = vmatprep.subr.bf16.mxu0 %v3061_v28  ;;  %v1318_v28 = vld [vmem:[#allocation16] sm:$0x3] }
 0x6c8   :  { %v1323_v31 = vrot.slane %v1318_v28, %v4366_v51  ;;  %v1327_v32 = vrot.slane %v1318_v28, %v4368_v54  ;;  %v1929_v28 = vld [vmem:[%s4502_s2 + $0x18] sm:$0xff] }
 0x6ca   :  { %3064 = vmatpush1.bf16.msra.mxu0 %v3063_v33 }
 0x6cb   :  { %3066 = vmatprep.subr.bf16.mxu0 %v3065_v34 }
 0x6ce   :  { %3068 = vmatpush1.bf16.msra.mxu0 %v3067_v40 }
 0x6cf   :  { %3070 = vmatprep.subr.bf16.mxu0 %v3069_v41  ;;  %v1235_v41 = vld [vmem:[#allocation15] sm:$0x3] }
 0x6d0   :  { %v1244_v43 = vrot.slane %v1235_v41, %v4368_v54  ;;  %v1240_v44 = vrot.slane %v1235_v41, %v4366_v51  ;;  %v1509_v51 = vld [vmem:[#allocation22] sm:$0xff] }
 0x6d1   :  { %v1839_v41 = vld [vmem:[#allocation27] sm:$0xff] }
 0x6d2   :  { %3072 = vmatpush1.bf16.msra.mxu0 %v3071_v49 }
 0x6d3   :  { %3074 = vmatprep.subr.bf16.mxu0 %v3073_v50 }
 0x6d6   :  { %3076 = vmatpush1.bf16.msra.mxu0 %v3075_v57 }
 0x6d7   :  { %3078 = vmatprep.subr.bf16.mxu0 %v3077_v58  ;;  %v1510_v58 = vld [vmem:[#allocation22 + $0x8] sm:$0xff] }
 0x6d8   :  { %v3109_v59 = vpack.c.bf16 %v1510_v58, %v1509_v51  ;;  %v1846_v51 = vld [vmem:[#allocation27 + $0x38] sm:$0xff] }
 0x6da   :  { %3080 = vmatpush1.bf16.msra.mxu0 %v3079_v63  ;;  %v2565_v63 = vld [vmem:[#allocation19] ss:$0 sm:$0xff] }
 0x6db   :  { %3082 = vmatprep.subr.bf16.mxu0 %v3081_v0 }
 0x6de   :  { %3084 = vmatpush1.bf16.msra.mxu0 %v3083_v5 }
 0x6df   :  { %3086 = vmatprep.subr.bf16.mxu0 %v3085_v7  ;;  %v1588_v7 = vld [vmem:[#allocation24] sm:$0xff] }
 0x6e0   :  { %v3112_v9 = vpack.c.bf16 %v1589_v8, %v1588_v7 }
 0x6e2   :  { %3088 = vmatpush1.bf16.msra.mxu0 %v3087_v13  ;;  %v1751_v13 = vld [vmem:[#allocation25 + $0x8] sm:$0xff] }
 0x6e3   :  { %3090 = vmatprep.subr.bf16.mxu0 %v3089_v14  ;;  %v3114_v14 = vpack.c.bf16 %v1751_v13, %v1750_v12  ;;  %v2134_v12 = vld [vmem:[#allocation33] sm:$0xff]  ;;  %v2135_v13 = vld [vmem:[#allocation33 + $0x8] sm:$0xff] }
 0x6e6   :  { %3092 = vmatpush1.bf16.msra.mxu0 %v3091_v19  ;;  %v1755_v19 = vld [vmem:[#allocation25 + $0x28] sm:$0xff] }
 0x6e7   :  { %3094 = vmatprep.subr.bf16.mxu0 %v3093_v20 }
 0x6ea   :  { %3096 = vmatpush1.bf16.msra.mxu0 %v3095_v23  ;;  %v3126_v23 = vpack.c.bf16 %v1757_v22, %v1756_v21 }
 0x6eb   :  { %3098 = vmatprep.subr.bf16.mxu0 %v3097_v6  ;;  %v1926_v6 = vld [vmem:[%s4502_s2] sm:$0xff] }
 0x6ee   :  { %3100 = vmatpush1.bf16.msra.mxu0 %v3099_v10  ;;  %v3146_v10 = vpack.c.bf16 %v1927_v26, %v1926_v6  ;;  %v2140_v6 = vld [vmem:[#allocation33 + $0x30] sm:$0xff]  ;;  %v2141_v26 = vld [vmem:[#allocation33 + $0x38] sm:$0xff] }
 0x6ef   :  { %3105 = vmatprep.subr.bf16.mxu0 %v3980_v35 }
 0x780   :  { %v1092_v29 = vpop.f32.mrb[8].mxu0 }
 0x781   :  { %v2707_v30 = vpop.f32.mrb[9].mxu0  ;;  %v1093_v61 = vadd.f32 %v1092_v29, %v948_v60  ;;  %v3150_v29 = vpack.c.bf16 %v1929_v28, %v1928_v27  ;;  %v1937_v60 = vld [vmem:[%s4502_s2 + $0x58] sm:$0xff]  ;;  %v3222_v27 = vpack.c.bf16 %v2141_v26, %v2140_v6  ;;  %v2143_v28 = vld [vmem:[#allocation33 + $0x48] sm:$0xff]  ;;  %v2584_v26 = vld [vmem:[#allocation37] ss:$0 sm:$0xff] }
 0x782   :  { %v1930_v30 = vld [vmem:[%s4502_s2 + $0x20] sm:$0xff]  ;;  %v2583_v6 = vld [vmem:[#allocation36] ss:$0 sm:$0xff] }
 0x784   :  { %v1166_v33 = vpop.f32.mrb[10].mxu0 }
 0x785   :  { %v1330_v34 = vmul.f32 %v1323_v31, %v1166_v33  ;;  %v1168_v36 = vpop.f32.mrb[11].mxu0  ;;  %v1931_v31 = vld [vmem:[%s4502_s2 + $0x28] sm:$0xff] }
 0x786   :  { %v1331_v37 = vmul.f32 %v1327_v32, %v1168_v36  ;;  %1311 = vmatprep.mubr.f32.mxu0 %v1168_v36  ;;  %v3154_v32 = vpack.c.bf16 %v1931_v31, %v1930_v30  ;;  %v2145_v31 = vld [vmem:[#allocation33 + $0x58] sm:$0xff] }
 0x787   :  { %1312 = vmatmul.mubr.f32.vlgmr.msra.gmra.mrb[12].mxu0 %v1166_v33  ;;  %v1332_v38 = vsel %vm943_vm2, %v1330_v34, 0.0  ;;  %v1932_v33 = vld [vmem:[%s4502_s2 + $0x30] sm:$0xff]  ;;  %v1933_v34 = vld [vmem:[%s4502_s2 + $0x38] sm:$0xff] }
 0x788   :  { %v1333_v39 = vsel %vm943_vm2, %v1331_v37, 0.0  ;;  %3107 = vmatpush3.bf16.msra.mxu0 %v4383_v45  ;;  %2712 = vmatprep.mubr.msk.f32.mxu0 %vm3981_vm3, %v3979_v42  ;;  %v3158_v36 = vpack.c.bf16 %v1933_v34, %v1932_v33  ;;  %v1934_v37 = vld [vmem:[%s4502_s2 + $0x40] sm:$0xff] }
 0x789   :  { %v1334_v40 = vadd.f32 %v1333_v39, %v1332_v38  ;;  %3115 = vmatprep.subr.bf16.mxu0 %v3114_v14  ;;  %v1935_v38 = vld [vmem:[%s4502_s2 + $0x48] sm:$0xff]  ;;  %v2146_v33 = vld [vmem:[#allocation33 + $0x60] sm:$0xff] }
 0x78a   :  { %v3162_v39 = vpack.c.bf16 %v1935_v38, %v1934_v37  ;;  %v2147_v34 = vld [vmem:[#allocation33 + $0x68] sm:$0xff]  ;;  %v2148_v37 = vld [vmem:[#allocation33 + $0x70] sm:$0xff]  ;;  %v2149_v38 = vld [vmem:[#allocation33 + $0x78] sm:$0xff] }
 0x78b   :  { %1335 = vadd.xlane.f32.xlu0 %v1334_v40 }
 0x818   :  { %v1336_v55 = vpop.xlane.xlu0 %1335 }
 0x85a   :  { %v1313_v46 = vpop.f32.mrb[12].mxu0 }
 0x85b   :  { %v1315_v48 = vpop.f32.mrb[13].mxu0  ;;  %v1314_v50 = vadd.f32 %v1313_v46, %v1240_v44  ;;  %v1841_v46 = vld [vmem:[#allocation27 + $0x10] sm:$0xff] }
 0x85c   :  { %v1316_v49 = vadd.f32 %v1315_v48, %v1244_v43  ;;  %v1840_v43 = vld [vmem:[#allocation27 + $0x8] sm:$0xff]  ;;  %v1842_v48 = vld [vmem:[#allocation27 + $0x18] sm:$0xff] }
 0x85e   :  { %1401 = vmatprep.mubr.f32.mxu1 %v1316_v49  ;;  %v3130_v49 = vpack.c.bf16 %v1840_v43, %v1839_v41 }
 0x85f   :  { %1402 = vmatmul.mubr.f32.vlgmr.msra.gmra.mrb[6].mxu1 %v1314_v50 }
 0x860   :  { %2719 = vmatprep.mubr.msk.f32.mxu1 %vm3981_vm3, %v3979_v42  ;;  %3110 = vmatpush3.bf16.msra.mxu1 %v3109_v59  ;;  %v1936_v59 = vld [vmem:[%s4502_s2 + $0x50] sm:$0xff] }
 0x861   :  { %3111 = vmatprep.subr.bf16.mxu1 %v3980_v35 }
 0x932   :  { %v1403_v45 = vpop.f32.mrb[6].mxu1 }
 0x933   :  { %v1407_v52 = vmul.f32 %v1403_v45, %v4388_v47  ;;  %v1405_v53 = vpop.f32.mrb[7].mxu1  ;;  %v1664_v45 = vld [vmem:[%s4500_s25 + $0x8] sm:$0xff] }
 0x934   :  { %v3134_v53 = vpack.c.bf16 %v1842_v48, %v1841_v46  ;;  %v2577_v48 = vld [vmem:[#allocation28] ss:$0 sm:$0xff] }
 0x935   :  { %2713 = vmatmul.mubr.msk.f32.vlgmr.msra.gmra.mrb[14].mxu0 %vm707_vm1, %v1407_v52 }
 0x936   :  { %3117 = vmatpush3.bf16.msra.mxu0 %v3114_v14  ;;  %v2136_v14 = vld [vmem:[#allocation33 + $0x10] sm:$0xff] }
 0x937   :  { %3119 = vmatprep.subr.bf16.mxu0 %v3118_v18  ;;  %v3214_v17 = vpack.c.bf16 %v2137_v16, %v2136_v14  ;;  %v2128_v14 = vld [vmem:[#allocation31 + $0x50] sm:$0xff] }
 0x93a   :  { %3121 = vmatpush3.bf16.msra.mxu0 %v3118_v18  ;;  %v2138_v18 = vld [vmem:[#allocation33 + $0x20] sm:$0xff] }
 0xa08   :  { %v1477_v56 = vpop.f32.mrb[14].mxu0 }
 0xa09   :  { %v1478_v54 = vadd.f32 %v1477_v56, %v1336_v55  ;;  %v2714_v57 = vpop.f32.mrb[15].mxu0  ;;  %v1843_v55 = vld [vmem:[#allocation27 + $0x20] sm:$0xff]  ;;  %v1844_v56 = vld [vmem:[#allocation27 + $0x28] sm:$0xff] }
 0xa0a   :  { %v1845_v57 = vld [vmem:[#allocation27 + $0x30] sm:$0xff] }
 0xa0b   :  { %1482 = vrot.lane.b32.xlu0 %v1478_v54, %s3961_s20  ;;  %s4501_s20 = sld [smem:[#allocation52_spill]]  ;;  %v3138_v54 = vpack.c.bf16 %v1844_v56, %v1843_v55  ;;  %v3142_v58 = vpack.c.bf16 %v1846_v51, %v1845_v57 }
 0xa11   :  { %v434_v24 = vld [vmem:[%s4501_s20] sm:$0xff]  ;;  %v435_v25 = vld [vmem:[%s4501_s20 + $0x8] sm:$0xff] }
 0xa12   :  { %2750 = vmatprep.mubr.msk.f32.mxu0 %vm438_vm0, %v434_v24 }
 0xa7d   :  { %v1483_v47 = vpop.permute.xlu0 %1482 }
 0xa7e   :  { %v1486_v0 = vsel %vm1485_vm4, %v1093_v61, %v1483_v47  ;;  %v1938_v61 = vld [vmem:[%s4502_s2 + $0x60] sm:$0xff]  ;;  %v1939_v47 = vld [vmem:[%s4502_s2 + $0x68] sm:$0xff] }
 0xa7f   :  { %v1494_v1 = vmul.f32 %v2564_v62, %v1486_v0  ;;  %v3166_v62 = vpack.c.bf16 %v1937_v60, %v1936_v59  ;;  %v1940_v0 = vld [vmem:[%s4502_s2 + $0x70] sm:$0xff]  ;;  %v2118_v60 = vld [vmem:[#allocation31] sm:$0xff] }
 0xa81   :  { %v1502_v2 = vadd.f32 %v2565_v63, %v1494_v1  ;;  %v3170_v63 = vpack.c.bf16 %v1939_v47, %v1938_v61  ;;  %v1941_v1 = vld [vmem:[%s4502_s2 + $0x78] sm:$0xff]  ;;  %v2119_v61 = vld [vmem:[#allocation31 + $0x8] sm:$0xff] }
 0xa82   :  { %v2308_v47 = vld [vmem:[%s4504_s24] sm:$0xff] }
 0xa83   :  { %v2566_v3 = vmul.f32 -1.442695, %v1502_v2  ;;  %v3174_v2 = vpack.c.bf16 %v1941_v1, %v1940_v0  ;;  %v2120_v0 = vld [vmem:[#allocation31 + $0x10] sm:$0xff]  ;;  %v2121_v1 = vld [vmem:[#allocation31 + $0x18] sm:$0xff] }
 0xa85   :  { %3353 = vpow2.f32 %v2566_v3 }
 0xa8f   :  { %v3354_v4 = vpop.eup %3353 }
 0xa90   :  { %v1506_v5 = vadd.f32 1.0, %v3354_v4 }
 0xa92   :  { %3355 = vrcp.f32 %v1506_v5 }
 0xa9c   :  { %v3356_v11 = vpop.eup %3355 }
 0xa9d   :  { %2720 = vmatmul.mubr.msk.f32.vlgmr.msra.gmra.mrb[8].mxu1 %vm707_vm1, %v3356_v11  ;;  %vm1585_vm5 = vcmp.gt.f32.partialorder %v3356_v11, 0.5 }
 0xa9e   :  { %3113 = vmatpush3.bf16.msra.mxu1 %v3112_v9  ;;  %2726 = vmatprep.mubr.msk.f32.mxu1 %vm3981_vm3, %v3979_v42  ;;  %v2568_v35 = vsel %vm1585_vm5, 1.0, %v3979_v42  ;;  %v1754_v42 = vld [vmem:[#allocation25 + $0x20] sm:$0xff] }
 0xa9f   :  { %v3122_v20 = vpack.c.bf16 %v1755_v19, %v1754_v42  ;;  %v2139_v42 = vld [vmem:[#allocation33 + $0x28] sm:$0xff] }
 0xaa0   :  { %v3218_v19 = vpack.c.bf16 %v2139_v42, %v2138_v18  ;;  %v2131_v18 = vld [vmem:[#allocation31 + $0x68] sm:$0xff] }
 0xaa1   :  { %2727 = vmatmul.mubr.msk.f32.vlgmr.msra.gmra.mrb[10].mxu1 %vm707_vm1, %v2568_v35  ;;  %3123 = vmatprep.subr.bf16.mxu0 %v3122_v20 }
 0xaa2   :  { %2731 = vmatprep.mubr.msk.f32.mxu1 %vm1665_vm6, %v1663_v15  ;;  %3125 = vmatpush3.bf16.msra.mxu0 %v3122_v20  ;;  %v3210_v15 = vpack.c.bf16 %v2135_v13, %v2134_v12  ;;  %v2127_v12 = vld [vmem:[#allocation31 + $0x48] sm:$0xff] }
 0xaa3   :  { %3127 = vmatprep.subr.bf16.mxu0 %v3126_v23 }
 0xaa6   :  { %3129 = vmatpush3.bf16.msra.mxu0 %v3126_v23 }
 0xaa7   :  { %3147 = vmatprep.subr.bf16.mxu0 %v3146_v10 }
 0xaa9   :  { %2751 = vmatmul.mubr.msk.f32.vlgmr.msra.gmra.mrb[16].mxu0 %vm438_vm0, %v435_v25 }
 0xaaa   :  { %3149 = vmatpush3.bf16.msra.mxu0 %v3146_v10 }
 0xaab   :  { %3151 = vmatprep.subr.bf16.mxu0 %v3150_v29 }
 0xaae   :  { %3153 = vmatpush3.bf16.msra.mxu0 %v3150_v29 }
 0xaaf   :  { %3155 = vmatprep.subr.bf16.mxu0 %v3154_v32 }
 0xab2   :  { %3157 = vmatpush3.bf16.msra.mxu0 %v3154_v32 }
 0xab3   :  { %3159 = vmatprep.subr.bf16.mxu0 %v3158_v36 }
 0xab6   :  { %3161 = vmatpush3.bf16.msra.mxu0 %v3158_v36 }
 0xab7   :  { %3163 = vmatprep.subr.bf16.mxu0 %v3162_v39 }
 0xaba   :  { %3165 = vmatpush3.bf16.msra.mxu0 %v3162_v39 }
 0xabb   :  { %3167 = vmatprep.subr.bf16.mxu0 %v3166_v62 }
 0xabe   :  { %3169 = vmatpush3.bf16.msra.mxu0 %v3166_v62 }
 0xabf   :  { %3171 = vmatprep.subr.bf16.mxu0 %v3170_v63 }
 0xac2   :  { %3173 = vmatpush3.bf16.msra.mxu0 %v3170_v63 }
 0xac3   :  { %3175 = vmatprep.subr.bf16.mxu0 %v3174_v2 }
 0xac6   :  { %3177 = vmatpush3.bf16.msra.mxu0 %v3174_v2 }
 0xac7   :  { %3211 = vmatprep.subr.bf16.mxu0 %v3210_v15 }
 0xb70   :  { %v1580_v40 = vpop.f32.mrb[8].mxu1 }
 0xb71   :  { %1584 = vst [vmem:[%s4160_s30] sm:$0x3] %v1580_v40  ;;  %v2721_v44 = vpop.f32.mrb[9].mxu1  ;;  %s4503_s30 = sld [smem:[#allocation67_spill]] }
 0xb74   :  { %v1659_v50 = vpop.f32.mrb[10].mxu1 }
 0xb75   :  { %v2728_v52 = vpop.f32.mrb[11].mxu1  ;;  %2729 = vmatprep.subr.msk.mxu1 %vm943_vm2, %v1659_v50 }
 0xb76   :  { %2730 = vmatpush3.msk.msra.mxu1 %vm943_vm2, %v1659_v50 }
 0xb77   :  { %3131 = vmatprep.subr.bf16.mxu1 %v3130_v49  ;;  %2732 = vmatmul.mubr.msk.f32.vlgmr.msra.gmra.mrb[12].mxu1 %vm1665_vm6, %v1664_v45  ;;  %v2225_v57 = vld [vmem:[%s4503_s30] sm:$0xff] }
 0xb78   :  { %3133 = vmatpush3.bf16.msra.mxu1 %v3130_v49  ;;  %2769 = vmatprep.mubr.msk.f32.mxu1 %vm438_vm0, %v434_v24 }
 0xb79   :  { %3135 = vmatprep.subr.bf16.mxu1 %v3134_v53 }
 0xb7c   :  { %3137 = vmatpush3.bf16.msra.mxu1 %v3134_v53  ;;  %v2752_v3 = vpop.f32.mrb[16].mxu0  ;;  %v2578_v53 = vld [vmem:[#allocation30] ss:$0 sm:$0xff] }
 0xb7d   :  { %3139 = vmatprep.subr.bf16.mxu1 %v3138_v54  ;;  %v1830_v4 = vpop.f32.mrb[17].mxu0 }
 0xb80   :  { %3141 = vmatpush3.bf16.msra.mxu1 %v3138_v54 }
 0xb81   :  { %3143 = vmatprep.subr.bf16.mxu1 %v3142_v58 }
 0xb84   :  { %3145 = vmatpush3.bf16.msra.mxu1 %v3142_v58 }
 0xb85   :  { %3179 = vmatprep.subr.bf16.mxu1 %v3146_v10 }
 0xb87   :  { %2770 = vmatmul.mubr.msk.f32.vlgmr.msra.gmra.mrb[14].mxu1 %vm438_vm0, %v435_v25 }
 0xb88   :  { %3181 = vmatpush3.bf16.msra.mxu1 %v3146_v10  ;;  %v2142_v10 = vld [vmem:[#allocation33 + $0x40] sm:$0xff] }
 0xb89   :  { %3183 = vmatprep.subr.bf16.mxu1 %v3150_v29  ;;  %v3226_v30 = vpack.c.bf16 %v2143_v28, %v2142_v10 }
 0xb8c   :  { %3185 = vmatpush3.bf16.msra.mxu1 %v3150_v29  ;;  %v2144_v29 = vld [vmem:[#allocation33 + $0x50] sm:$0xff] }
 0xb8d   :  { %3187 = vmatprep.subr.bf16.mxu1 %v3154_v32 }
 0xb90   :  { %3189 = vmatpush3.bf16.msra.mxu1 %v3154_v32  ;;  %v3230_v32 = vpack.c.bf16 %v2145_v31, %v2144_v29 }
 0xb91   :  { %3191 = vmatprep.subr.bf16.mxu1 %v3158_v36 }
 0xb94   :  { %3193 = vmatpush3.bf16.msra.mxu1 %v3158_v36  ;;  %v3234_v36 = vpack.c.bf16 %v2147_v34, %v2146_v33  ;;  %v2585_v33 = vld [vmem:[#allocation34] ss:$0 sm:$0xff] }
 0xb95   :  { %3195 = vmatprep.subr.bf16.mxu1 %v3162_v39 }
 0xb98   :  { %3197 = vmatpush3.bf16.msra.mxu1 %v3162_v39  ;;  %v3238_v39 = vpack.c.bf16 %v2149_v38, %v2148_v37 }
 0xb99   :  { %3199 = vmatprep.subr.bf16.mxu1 %v3166_v62 }
 0xb9c   :  { %3201 = vmatpush3.bf16.msra.mxu1 %v3166_v62  ;;  %v2226_v62 = vld [vmem:[%s4503_s30 + $0x8] sm:$0xff] }
 0xb9d   :  { %3203 = vmatprep.subr.bf16.mxu1 %v3170_v63 }
 0xba0   :  { %3205 = vmatpush3.bf16.msra.mxu1 %v3170_v63  ;;  %v3250_v63 = vpack.c.bf16 %v2119_v61, %v2118_v60 }
 0xba1   :  { %3207 = vmatprep.subr.bf16.mxu1 %v3174_v2 }
 0xba4   :  { %3209 = vmatpush3.bf16.msra.mxu1 %v3174_v2  ;;  %v2309_v2 = vld [vmem:[%s4504_s24 + $0x8] sm:$0xff] }
 0xc4a   :  { %v2733_v5 = vpop.f32.mrb[12].mxu1 }
 0xc4b   :  { %v1741_v7 = vpop.f32.mrb[13].mxu1  ;;  %vm1923_vm7 = vcmp.gt.f32.partialorder %v2733_v5, 0.5  ;;  %v2123_v5 = vld [vmem:[#allocation31 + $0x28] sm:$0xff] }
 0xc4c   :  { %vm1922_vm8 = vcmp.gt.f32.partialorder %v1741_v7, 0.5 }
 0xc5a   :  { %v2771_v8 = vpop.f32.mrb[14].mxu1 }
 0xc5b   :  { %v1925_v9 = vsel %vm1923_vm7, %v2771_v8, %v2752_v3  ;;  %v1913_v11 = vpop.f32.mrb[15].mxu1  ;;  %v3254_v3 = vpack.c.bf16 %v2121_v1, %v2120_v0  ;;  %v2124_v8 = vld [vmem:[#allocation31 + $0x30] sm:$0xff] }
 0xc5c   :  { %v1924_v35 = vsel %vm1922_vm8, %v1913_v11, %v1830_v4  ;;  %v2122_v4 = vld [vmem:[#allocation31 + $0x20] sm:$0xff] }
 0xc5d   :  { %2804 = vmatprep.mubr.f32.mxu0 %v1924_v35  ;;  %v3258_v7 = vpack.c.bf16 %v2123_v5, %v2122_v4 }
 0xc5e   :  { %2805 = vmatmul.mubr.f32.vlgmr.msra.gmra.mrb[18].mxu0 %v1925_v9 }
 0xc5f   :  { %3213 = vmatpush3.bf16.msra.mxu0 %v3210_v15  ;;  %v2129_v15 = vld [vmem:[#allocation31 + $0x58] sm:$0xff] }
 0xc60   :  { %3215 = vmatprep.subr.bf16.mxu0 %v3214_v17  ;;  %v3270_v16 = vpack.c.bf16 %v2129_v15, %v2128_v14 }
 0xc63   :  { %3217 = vmatpush3.bf16.msra.mxu0 %v3214_v17  ;;  %v2130_v17 = vld [vmem:[#allocation31 + $0x60] sm:$0xff] }
 0xc64   :  { %3219 = vmatprep.subr.bf16.mxu0 %v3218_v19  ;;  %v3274_v42 = vpack.c.bf16 %v2131_v18, %v2130_v17 }
 0xc67   :  { %3221 = vmatpush3.bf16.msra.mxu0 %v3218_v19  ;;  %v2132_v19 = vld [vmem:[#allocation31 + $0x70] sm:$0xff] }
 0xc68   :  { %3223 = vmatprep.subr.bf16.mxu0 %v3222_v27 }
 0xc6b   :  { %3225 = vmatpush3.bf16.msra.mxu0 %v3222_v27 }
 0xc6c   :  { %3227 = vmatprep.subr.bf16.mxu0 %v3226_v30 }
 0xc6f   :  { %3229 = vmatpush3.bf16.msra.mxu0 %v3226_v30 }
 0xc70   :  { %3231 = vmatprep.subr.bf16.mxu0 %v3230_v32 }
 0xc73   :  { %3233 = vmatpush3.bf16.msra.mxu0 %v3230_v32 }
 0xc74   :  { %3235 = vmatprep.subr.bf16.mxu0 %v3234_v36 }
 0xc77   :  { %3237 = vmatpush3.bf16.msra.mxu0 %v3234_v36 }
 0xc78   :  { %3239 = vmatprep.subr.bf16.mxu0 %v3238_v39 }
 0xc7b   :  { %3241 = vmatpush3.bf16.msra.mxu0 %v3238_v39 }
 0xd31   :  { %v2806_v20 = vpop.f32.mrb[18].mxu0 }
 0xd32   :  { %v2018_v21 = vsub.f32 %v1925_v9, %v2806_v20  ;;  %v2008_v22 = vpop.f32.mrb[19].mxu0  ;;  %v2125_v9 = vld [vmem:[#allocation31 + $0x38] sm:$0xff] }
 0xd33   :  { %v2017_v23 = vsub.f32 %v1924_v35, %v2008_v22  ;;  %v3262_v11 = vpack.c.bf16 %v2125_v9, %v2124_v8  ;;  %v2126_v35 = vld [vmem:[#allocation31 + $0x40] sm:$0xff]  ;;  %v2133_v20 = vld [vmem:[#allocation31 + $0x78] sm:$0xff] }
 0xd34   :  { %v2020_v25 = vmul.f32 %v2018_v21, %v2018_v21  ;;  %v3266_v13 = vpack.c.bf16 %v2127_v12, %v2126_v35 }
 0xd35   :  { %v2019_v24 = vmul.f32 %v2017_v23, %v2017_v23 }
 0xd37   :  { %2839 = vmatprep.mubr.f32.mxu1 %v2019_v24 }
 0xd38   :  { %2840 = vmatmul.mubr.f32.vlgmr.msra.gmra.mrb[16].mxu1 %v2020_v25 }
 0xd39   :  { %2881 = vmatprep.mubr.msk.f32.mxu1 %vm707_vm1, %v2225_v57 }
 0xe0b   :  { %v2841_v40 = vpop.f32.mrb[16].mxu1 }
 0xe0c   :  { %v2093_v41 = vadd.f32 1e-05, %v2841_v40  ;;  %v2087_v43 = vpop.f32.mrb[17].mxu1 }
 0xe0d   :  { %v2088_v44 = vadd.f32 1e-05, %v2087_v43 }
 0xe0e   :  { %3357 = vrsqrt.f32 %v2093_v41 }
 0xe0f   :  { %3359 = vrsqrt.f32 %v2088_v44 }
 0xe18   :  { %v3358_v46 = vpop.eup %3357 }
 0xe19   :  { %v3360_v49 = vpop.eup %3359  ;;  %v2099_v50 = vmul.f32 %v3358_v46, %v2018_v21  ;;  %v3278_v21 = vpack.c.bf16 %v2133_v20, %v2132_v19 }
 0xe1a   :  { %v2098_v45 = vmul.f32 %v3360_v49, %v2017_v23 }
 0xe1b   :  { %v2108_v52 = vmul.f32 %v2577_v48, %v2099_v50 }
 0xe1c   :  { %v2107_v55 = vmul.f32 %v2577_v48, %v2098_v45 }
 0xe1d   :  { %v2117_v54 = vadd.f32 %v2578_v53, %v2108_v52 }
 0xe1e   :  { %v2116_v56 = vadd.f32 %v2578_v53, %v2107_v55 }
 0xe20   :  { %2874 = vmatprep.mubr.f32.mxu0 %v2116_v56 }
 0xe21   :  { %2875 = vmatmul.mubr.f32.vlgmr.msra.gmra.mrb[20].mxu0 %v2117_v54 }
 0xef4   :  { %v2876_v51 = vpop.f32.mrb[20].mxu0 }
 0xef5   :  { %v2216_v58 = vpop.f32.mrb[21].mxu0 }
 0xef6   :  { %v3242_v59 = vpack.c.bf16 %v2876_v51, %v2216_v58 }
 0xef8   :  { %3243 = vmatprep.subr.bf16.mxu1 %v3242_v59 }
 0xef9   :  { %3245 = vmatpush3.bf16.msra.mxu1 %v3242_v59 }
 0xefa   :  { %3247 = vmatprep.subr.bf16.mxu1 %v3242_v59 }
 0xefc   :  { %2882 = vmatmul.mubr.msk.f32.vlgmr.msra.gmra.mrb[18].mxu1 %vm707_vm1, %v2226_v62 }
 0xefd   :  { %3249 = vmatpush3.bf16.msra.mxu1 %v3242_v59  ;;  %2888 = vmatprep.mubr.msk.f32.mxu1 %vm707_vm1, %v2308_v47 }
 0xefe   :  { %3251 = vmatprep.subr.bf16.mxu1 %v3250_v63 }
 0xf00   :  { %2889 = vmatmul.mubr.msk.f32.vlgmr.msra.gmra.mrb[20].mxu1 %vm707_vm1, %v2309_v2 }
 0xf01   :  { %3253 = vmatpush3.bf16.msra.mxu1 %v3250_v63  ;;  %2923 = vmatprep.mubr.f32.mxu1 %v2116_v56 }
 0xf02   :  { %3255 = vmatprep.subr.bf16.mxu1 %v3254_v3 }
 0xf05   :  { %3257 = vmatpush3.bf16.msra.mxu1 %v3254_v3 }
 0xf06   :  { %3259 = vmatprep.subr.bf16.mxu1 %v3258_v7 }
 0xf09   :  { %3261 = vmatpush3.bf16.msra.mxu1 %v3258_v7 }
 0xf0a   :  { %3263 = vmatprep.subr.bf16.mxu1 %v3262_v11 }
 0xf0d   :  { %3265 = vmatpush3.bf16.msra.mxu1 %v3262_v11 }
 0xf0e   :  { %3267 = vmatprep.subr.bf16.mxu1 %v3266_v13 }
 0xf11   :  { %3269 = vmatpush3.bf16.msra.mxu1 %v3266_v13 }
 0xf12   :  { %3271 = vmatprep.subr.bf16.mxu1 %v3270_v16 }
 0xf15   :  { %3273 = vmatpush3.bf16.msra.mxu1 %v3270_v16 }
 0xf16   :  { %3275 = vmatprep.subr.bf16.mxu1 %v3274_v42 }
 0xf19   :  { %3277 = vmatpush3.bf16.msra.mxu1 %v3274_v42 }
 0xf1a   :  { %3279 = vmatprep.subr.bf16.mxu1 %v3278_v21 }
 0xf1d   :  { %3281 = vmatpush3.bf16.msra.mxu1 %v3278_v21 }
 0xf20   :  { %2924 = vmatmul.mubr.f32.vlgmr.msra.gmra.mrb[22].mxu1 %v2117_v54 }
 0xfcf   :  { %v2883_v22 = vpop.f32.mrb[18].mxu1 }
 0xfd0   :  { %v2299_v23 = vpop.f32.mrb[19].mxu1  ;;  %v2399_v27 = vmul.f32 %v2883_v22, %v2583_v6 }
 0xfd1   :  { %v2398_v10 = vmul.f32 %v2583_v6, %v2299_v23 }
 0xfd3   :  { %v2890_v24 = vpop.f32.mrb[20].mxu1 }
 0xfd4   :  { %v2382_v25 = vpop.f32.mrb[21].mxu1  ;;  %v2483_v29 = vmul.f32 %v2890_v24, %v2584_v26 }
 0xfd5   :  { %v2482_v32 = vmul.f32 %v2584_v26, %v2382_v25 }
 0xff3   :  { %v2925_v28 = vpop.f32.mrb[22].mxu1 }
 0xff4   :  { %v2472_v30 = vadd.f32 %v2925_v28, %v2399_v27  ;;  %v2466_v31 = vpop.f32.mrb[23].mxu1 }
 0xff5   :  { %v2467_v34 = vadd.f32 %v2466_v31, %v2398_v10 }
 0xff6   :  { %v2485_v36 = vadd.f32 %v2483_v29, %v2472_v30 }
 0xff7   :  { %v2484_v37 = vadd.f32 %v2482_v32, %v2467_v34 }
 0xff8   :  { %v2494_v38 = vadd.f32 %v2585_v33, %v2485_v36 }
 0xff9   :  { %v2493_v39 = vadd.f32 %v2585_v33, %v2484_v37 }
 0xffa   :  { %v2496_v40 = vmax.f32 %v2494_v38, 0.0 }
 0xffb   :  { %v2495_v41 = vmax.f32 %v2493_v39, 0.0 }
 0xffc   :  { %2498 = vst [vmem:[%s4155_s27 + $0x8] sm:$0xff] %v2496_v40 }
 0xffd   :  { %2497 = vst [vmem:[%s4155_s27] sm:$0xff] %v2495_v41 }
 0xffe   :  { %2507 = vsyncpa [#allocation3], 1 }
 0xfff   :  { %2508 = vsyncpa [#allocation5], 1 }
0x1000   :  { %2509 = vsyncpa [#allocation8], 1 }
0x1001   :  { %2510 = vsyncpa [#allocation11], 1 }
0x1002   :  { %2511 = vsyncpa [#allocation14], 1 }
0x1003   :  { %2512 = vsyncpa [#allocation17], 1 }
0x1004   :  { %2513 = vsyncpa [#allocation20], 1 }
0x1005   :  { %2514 = vsyncpa [#allocation23], 1 }
0x1006   :  { %2515 = vsyncpa [#allocation26], 1 }
0x1007   :  { %2516 = vsyncpa [#allocation29], 1 }
0x1008   :  { %2517 = vsyncpa [#allocation32], 1 }
0x1009   :  { %2518 = vsyncpa [#allocation35], 1 }
0x100a   :  { %2519 = vsyncpa [#allocation38], 1 }

</bundles_post_ra>
